<compile_context>
chip_gen: v6e
topology: v6e:2x2x1
jax: 0.10.0
libtpu: 0.0.40
codegen_flags: <defaults>
</compile_context>

<pallas_src>
import math

import jax
import jax.numpy as jnp
from jax import lax
from jax.experimental import pallas as pl
from jax.experimental.pallas import tpu as pltpu  # noqa: F401  (TPU backend)


# ----------------------------------------------------------------------------
# Fused kernel: embedding + L stacked LSTM layers over T steps + head.
# Everything (weights, ids, states) is resident in VMEM (tiny model).
# ----------------------------------------------------------------------------
def _make_fused_kernel(L, T, B, H, E, V, max_norm):
    TB = T * B

    def kernel(*refs):
        # inputs : ids, emb, h0, c0, wih_0..L-1, whh_0..L-1, b_0..L-1,
        #          w1, b1, w2, b2
        # outputs: logits, h_out, c_out
        ids_ref, emb_ref, h0_ref, c0_ref = refs[0:4]
        wih_refs = refs[4:4 + L]
        whh_refs = refs[4 + L:4 + 2 * L]
        b_refs = refs[4 + 2 * L:4 + 3 * L]
        w1_ref, b1_ref, w2_ref, b2_ref = refs[4 + 3 * L:4 + 3 * L + 4]
        logits_ref, h_out_ref, c_out_ref = refs[4 + 3 * L + 4:]

        # ---- Embedding lookup as one-hot matmul (exact, rows are 0/1) ------
        ids = ids_ref[...]                                   # (TB, 1) int32
        vocab_iota = lax.broadcasted_iota(jnp.int32, (TB, V), 1)
        onehot = jnp.where(ids == vocab_iota,
                           jnp.float32(1.0), jnp.float32(0.0))   # (TB, V)
        x = jnp.dot(onehot, emb_ref[...],
                    preferred_element_type=jnp.float32)      # (TB, E) time-major
        # nn.Embedding(max_norm): renorm rows whose L2 norm exceeds max_norm
        # (scale = max_norm / (norm + 1e-7), matching torch.embedding_renorm_).
        norm = jnp.sqrt(jnp.sum(x * x, axis=-1, keepdims=True))
        scale = jnp.where(norm > max_norm, max_norm / (norm + 1e-7), 1.0)
        x = x * scale

        # ---- Stacked LSTM, fully unrolled over T ---------------------------
        # Hoist weight loads and bias broadcasts out of the loop
        # (JAX does not CSE broadcast_in_dim).
        wih = [r[...] for r in wih_refs]                     # (Din, 4H)
        whh = [r[...] for r in whh_refs]                     # (H, 4H)
        bias = [jnp.broadcast_to(r[...], (B, 4 * H)) for r in b_refs]

        hs = [h0_ref[l] for l in range(L)]
        cs = [c0_ref[l] for l in range(L)]
        for t in range(T):
            inp = x[t * B:(t + 1) * B, :]                    # (B, Din) static slice
            for l in range(L):
                gates = (jnp.dot(inp, wih[l],
                                 preferred_element_type=jnp.float32)
                         + jnp.dot(hs[l], whh[l],
                                   preferred_element_type=jnp.float32)
                         + bias[l])                          # (B, 4H)
                # Full-slab sigmoid pass, then lane slices (PyTorch gate order
                # i, f, g, o).
                sig = jax.nn.sigmoid(gates)
                i = sig[:, 0 * H:1 * H]
                f = sig[:, 1 * H:2 * H]
                o = sig[:, 3 * H:4 * H]
                g = jnp.tanh(gates[:, 2 * H:3 * H])
                c_new = f * cs[l] + i * g
                h_new = o * jnp.tanh(c_new)
                hs[l] = h_new
                cs[l] = c_new
                inp = h_new

        # Final-state stores happen exactly once (not per time step).
        for l in range(L):
            h_out_ref[l] = hs[l]
            c_out_ref[l] = cs[l]

        # ---- Head: h.mean(dim=0) -> linear_1 -> linear_2 --------------------
        # (dropout modules are not applied in the PyTorch forward)
        h_mean = hs[0]
        for l in range(1, L):
            h_mean = h_mean + hs[l]
        h_mean = h_mean * (1.0 / L)
        z = (jnp.dot(h_mean, w1_ref[...],
                     preferred_element_type=jnp.float32) + b1_ref[...])
        logits_ref[...] = (jnp.dot(z, w2_ref[...],
                                   preferred_element_type=jnp.float32)
                           + b2_ref[...])

    return kernel


def char_model_forward(params, x_ids, h0=None, c0=None):
    B, T = x_ids.shape
    L = len(params["lstm"])
    H = params["lstm"][0]["whh_t"].shape[0]
    V, E = params["embedding"].shape
    if h0 is None:
        h0 = jnp.zeros((L, B, H), jnp.float32)
    if c0 is None:
        c0 = jnp.zeros((L, B, H), jnp.float32)

    # Time-major flatten of the tiny id matrix in the wrapper (so the kernel
    # needs only static row slices, no reshapes of values inside the kernel).
    ids_flat = x_ids.T.reshape(T * B, 1).astype(jnp.int32)

    args = [ids_flat, params["embedding"], h0, c0]
    args += [p["wih_t"] for p in params["lstm"]]
    args += [p["whh_t"] for p in params["lstm"]]
    args += [p["b"] for p in params["lstm"]]
    args += [params["w1_t"], params["b1"], params["w2_t"], params["b2"]]

    logits, h, c = pl.pallas_call(
        _make_fused_kernel(L, T, B, H, E, V, float(params["max_norm"])),
        out_shape=(jax.ShapeDtypeStruct((B, V), jnp.float32),
                   jax.ShapeDtypeStruct((L, B, H), jnp.float32),
                   jax.ShapeDtypeStruct((L, B, H), jnp.float32)),
    )(*args)
    return logits, h, c


# ----------------------------------------------------------------------------
# Pure-JAX reference (correctness check of the Pallas kernel).
# ----------------------------------------------------------------------------
def _embed_ref(params, x_ids):
    e = jnp.take(params["embedding"], x_ids.T, axis=0)        # (T, B, E)
    norm = jnp.sqrt(jnp.sum(e * e, axis=-1, keepdims=True))
    scale = jnp.where(norm > params["max_norm"],
                      params["max_norm"] / (norm + 1e-7), 1.0)
    return (e * scale).astype(jnp.float32)


def reference_forward(params, x_ids, h0=None, c0=None):
    x_tm = _embed_ref(params, x_ids)                          # (T, B, E)
    L = len(params["lstm"])
    B = x_ids.shape[0]
    H = params["lstm"][0]["whh_t"].shape[0]
    if h0 is None:
        h0 = jnp.zeros((L, B, H), jnp.float32)
    if c0 is None:
        c0 = jnp.zeros((L, B, H), jnp.float32)

    def layer(x_tm, p, h, c):
        def step(carry, x_t):
            h, c = carry
            gates = x_t @ p["wih_t"] + h @ p["whh_t"] + p["b"]
            Hh = h.shape[-1]
            i = jax.nn.sigmoid(gates[:, 0 * Hh:1 * Hh])
            f = jax.nn.sigmoid(gates[:, 1 * Hh:2 * Hh])
            g = jnp.tanh(gates[:, 2 * Hh:3 * Hh])
            o = jax.nn.sigmoid(gates[:, 3 * Hh:4 * Hh])
            c2 = f * c + i * g
            h2 = o * jnp.tanh(c2)
            return (h2, c2), h2
        (hT, cT), ys = jax.lax.scan(step, (h, c), x_tm)
        return ys, hT, cT

    hs, cs = [], []
    y = x_tm
    for l in range(L):
        y, hT, cT = layer(y, params["lstm"][l], h0[l], c0[l])
        hs.append(hT)
        cs.append(cT)
    h = jnp.stack(hs, 0)
    c = jnp.stack(cs, 0)
    h_mean = h.mean(axis=0)
    z = h_mean @ params["w1_t"] + params["b1"]
    logits = z @ params["w2_t"] + params["b2"]
    return logits, h, c


# ----------------------------------------------------------------------------
# Deterministic parameter init (shapes from CharModel.__init__).
# ----------------------------------------------------------------------------
def init_params(key, vocab, emb_dim, hidden, dense, num_layers, max_norm):
    keys = iter(jax.random.split(key, 8 + 4 * num_layers))
    emb = jax.random.normal(next(keys), (vocab, emb_dim), jnp.float32)
    emb = emb.at[vocab - 1].set(0.0)            # padding_idx = input_size - 1
    k = 1.0 / math.sqrt(hidden)
    lstm = []
    for l in range(num_layers):
        din = emb_dim if l == 0 else hidden
        wih = jax.random.uniform(next(keys), (4 * hidden, din), jnp.float32, -k, k)
        whh = jax.random.uniform(next(keys), (4 * hidden, hidden), jnp.float32, -k, k)
        bih = jax.random.uniform(next(keys), (4 * hidden,), jnp.float32, -k, k)
        bhh = jax.random.uniform(next(keys), (4 * hidden,), jnp.float32, -k, k)
        lstm.append(dict(wih_t=wih.T, whh_t=whh.T, b=(bih + bhh)[None, :]))
    k1 = 1.0 / math.sqrt(hidden)
    w1 = jax.random.uniform(next(keys), (dense, hidden), jnp.float32, -k1, k1)
    b1 = jax.random.uniform(next(keys), (dense,), jnp.float32, -k1, k1)
    k2 = 1.0 / math.sqrt(dense)
    w2 = jax.random.uniform(next(keys), (vocab, dense), jnp.float32, -k2, k2)
    b2 = jax.random.uniform(next(keys), (vocab,), jnp.float32, -k2, k2)
    return dict(embedding=emb, max_norm=float(max_norm), lstm=lstm,
                w1_t=w1.T, b1=b1[None, :], w2_t=w2.T, b2=b2[None, :])


if __name__ == "__main__":
    # Small config: input_size(vocab)=32, embedding_dim=16, hidden=32,
    # dense=64, num_layers=2, max_norm=1.0; batch=2, seq=8.
    VOCAB, EMB, HID, DENSE, LAYERS, MAX_NORM = 32, 16, 32, 64, 2, 1.0
    B, T = 2, 8

    key = jax.random.PRNGKey(0)
    pkey, xkey = jax.random.split(key)
    params = init_params(pkey, VOCAB, EMB, HID, DENSE, LAYERS, MAX_NORM)
    x_ids = jax.random.randint(xkey, (B, T), 0, VOCAB, dtype=jnp.int32)

    logits, h, c = char_model_forward(params, x_ids)
    jax.block_until_ready((logits, h, c))

    ref_logits, ref_h, ref_c = reference_forward(params, x_ids)
    assert logits.shape == (B, VOCAB)
    assert h.shape == (LAYERS, B, HID) and c.shape == (LAYERS, B, HID)
    assert jnp.allclose(logits, ref_logits, atol=1e-4, rtol=1e-4)
    assert jnp.allclose(h, ref_h, atol=1e-4, rtol=1e-4)
    assert jnp.allclose(c, ref_c, atol=1e-4, rtol=1e-4)
    print("KERNEL_OK")
</pallas_src>

<mosaic_0001>
module attributes {stable_mosaic.version = 11 : i64} {
  func.func @kernel(%arg0: memref<16x1xi32, #tpu.memory_space<vmem>>, %arg1: memref<32x16xf32, #tpu.memory_space<vmem>>, %arg2: memref<2x2x32xf32, #tpu.memory_space<vmem>>, %arg3: memref<2x2x32xf32, #tpu.memory_space<vmem>>, %arg4: memref<16x128xf32, #tpu.memory_space<vmem>>, %arg5: memref<32x128xf32, #tpu.memory_space<vmem>>, %arg6: memref<32x128xf32, #tpu.memory_space<vmem>>, %arg7: memref<32x128xf32, #tpu.memory_space<vmem>>, %arg8: memref<1x128xf32, #tpu.memory_space<vmem>>, %arg9: memref<1x128xf32, #tpu.memory_space<vmem>>, %arg10: memref<32x64xf32, #tpu.memory_space<vmem>>, %arg11: memref<1x64xf32, #tpu.memory_space<vmem>>, %arg12: memref<64x32xf32, #tpu.memory_space<vmem>>, %arg13: memref<1x32xf32, #tpu.memory_space<vmem>>, %arg14: memref<2x32xf32, #tpu.memory_space<vmem>>, %arg15: memref<2x2x32xf32, #tpu.memory_space<vmem>>, %arg16: memref<2x2x32xf32, #tpu.memory_space<vmem>>) attributes {dimension_semantics = [], scalar_prefetch = 0 : i64, scratch_operands = 0 : i64, tpu.core_type = #tpu.core_type<tc>} {
    %c0 = arith.constant 0 : index
    %c0_0 = arith.constant 0 : index
    %0 = vector.load %arg0[%c0, %c0_0] : memref<16x1xi32, #tpu.memory_space<vmem>>, vector<16x1xi32>
    %1 = tpu.iota {dimensions = array<i32: 1>} : vector<16x32xi32>
    %2 = vector.broadcast %0 : vector<16x1xi32> to vector<16x32xi32>
    %3 = arith.cmpi eq, %2, %1 : vector<16x32xi32>
    %cst = arith.constant 1.000000e+00 : f32
    %cst_1 = arith.constant 0.000000e+00 : f32
    %4 = vector.broadcast %cst : f32 to vector<16x32xf32>
    %5 = vector.broadcast %cst_1 : f32 to vector<16x32xf32>
    %6 = arith.select %3, %4, %5 : vector<16x32xi1>, vector<16x32xf32>
    %c0_2 = arith.constant 0 : index
    %c0_3 = arith.constant 0 : index
    %7 = vector.load %arg1[%c0_2, %c0_3] : memref<32x16xf32, #tpu.memory_space<vmem>>, vector<32x16xf32>
    %cst_4 = arith.constant dense<0.000000e+00> : vector<16x16xf32>
    %8 = tpu.matmul %6, %7, %cst_4 {dimension_numbers = #tpu.dot_dimension_numbers<[1], [0], [0], [1], [0, 0, 1, 1], [], []>} : vector<16x32xf32>, vector<32x16xf32>, vector<16x16xf32> -> vector<16x16xf32>
    %9 = arith.mulf %8, %8 : vector<16x16xf32>
    %cst_5 = arith.constant dense<0.000000e+00> : vector<16xf32>
    %10 = vector.multi_reduction <add>, %9, %cst_5 [1] : vector<16x16xf32> to vector<16xf32>
    %11 = vector.shape_cast %10 : vector<16xf32> to vector<16x1xf32>
    %12 = math.sqrt %11 : vector<16x1xf32>
    %cst_6 = arith.constant 1.000000e+00 : f32
    %13 = vector.broadcast %cst_6 : f32 to vector<16x1xf32>
    %14 = arith.cmpf ogt, %12, %13 : vector<16x1xf32>
    %cst_7 = arith.constant 1.000000e-07 : f32
    %15 = vector.broadcast %cst_7 : f32 to vector<16x1xf32>
    %16 = arith.addf %12, %15 : vector<16x1xf32>
    %cst_8 = arith.constant 1.000000e+00 : f32
    %17 = vector.broadcast %cst_8 : f32 to vector<16x1xf32>
    %18 = arith.divf %17, %16 : vector<16x1xf32>
    %cst_9 = arith.constant 1.000000e+00 : f32
    %19 = vector.broadcast %cst_9 : f32 to vector<16x1xf32>
    %20 = arith.select %14, %18, %19 : vector<16x1xi1>, vector<16x1xf32>
    %21 = vector.broadcast %20 : vector<16x1xf32> to vector<16x16xf32>
    %22 = arith.mulf %8, %21 : vector<16x16xf32>
    %c0_10 = arith.constant 0 : index
    %c0_11 = arith.constant 0 : index
    %23 = vector.load %arg4[%c0_10, %c0_11] : memref<16x128xf32, #tpu.memory_space<vmem>>, vector<16x128xf32>
    %c0_12 = arith.constant 0 : index
    %c0_13 = arith.constant 0 : index
    %24 = vector.load %arg5[%c0_12, %c0_13] : memref<32x128xf32, #tpu.memory_space<vmem>>, vector<32x128xf32>
    %c0_14 = arith.constant 0 : index
    %c0_15 = arith.constant 0 : index
    %25 = vector.load %arg6[%c0_14, %c0_15] : memref<32x128xf32, #tpu.memory_space<vmem>>, vector<32x128xf32>
    %c0_16 = arith.constant 0 : index
    %c0_17 = arith.constant 0 : index
    %26 = vector.load %arg7[%c0_16, %c0_17] : memref<32x128xf32, #tpu.memory_space<vmem>>, vector<32x128xf32>
    %c0_18 = arith.constant 0 : index
    %c0_19 = arith.constant 0 : index
    %27 = vector.load %arg8[%c0_18, %c0_19] : memref<1x128xf32, #tpu.memory_space<vmem>>, vector<1x128xf32>
    %28 = vector.shape_cast %27 : vector<1x128xf32> to vector<1x128xf32>
    %29 = vector.broadcast %28 : vector<1x128xf32> to vector<2x128xf32>
    %c0_20 = arith.constant 0 : index
    %c0_21 = arith.constant 0 : index
    %30 = vector.load %arg9[%c0_20, %c0_21] : memref<1x128xf32, #tpu.memory_space<vmem>>, vector<1x128xf32>
    %31 = vector.shape_cast %30 : vector<1x128xf32> to vector<1x128xf32>
    %32 = vector.broadcast %31 : vector<1x128xf32> to vector<2x128xf32>
    %c0_22 = arith.constant 0 : index
    %c0_23 = arith.constant 0 : index
    %c0_24 = arith.constant 0 : index
    %33 = vector.load %arg2[%c0_22, %c0_23, %c0_24] : memref<2x2x32xf32, #tpu.memory_space<vmem>>, vector<1x2x32xf32>
    %34 = vector.shape_cast %33 : vector<1x2x32xf32> to vector<2x32xf32>
    %c1 = arith.constant 1 : index
    %c0_25 = arith.constant 0 : index
    %c0_26 = arith.constant 0 : index
    %35 = vector.load %arg2[%c1, %c0_25, %c0_26] : memref<2x2x32xf32, #tpu.memory_space<vmem>>, vector<1x2x32xf32>
    %36 = vector.shape_cast %35 : vector<1x2x32xf32> to vector<2x32xf32>
    %c0_27 = arith.constant 0 : index
    %c0_28 = arith.constant 0 : index
    %c0_29 = arith.constant 0 : index
    %37 = vector.load %arg3[%c0_27, %c0_28, %c0_29] : memref<2x2x32xf32, #tpu.memory_space<vmem>>, vector<1x2x32xf32>
    %38 = vector.shape_cast %37 : vector<1x2x32xf32> to vector<2x32xf32>
    %c1_30 = arith.constant 1 : index
    %c0_31 = arith.constant 0 : index
    %c0_32 = arith.constant 0 : index
    %39 = vector.load %arg3[%c1_30, %c0_31, %c0_32] : memref<2x2x32xf32, #tpu.memory_space<vmem>>, vector<1x2x32xf32>
    %40 = vector.shape_cast %39 : vector<1x2x32xf32> to vector<2x32xf32>
    %41 = vector.extract_strided_slice %22 {offsets = [0, 0], sizes = [2, 16], strides = [1, 1]} : vector<16x16xf32> to vector<2x16xf32>
    %cst_33 = arith.constant dense<0.000000e+00> : vector<2x128xf32>
    %42 = tpu.matmul %41, %23, %cst_33 {dimension_numbers = #tpu.dot_dimension_numbers<[1], [0], [0], [1], [0, 0, 1, 1], [], []>} : vector<2x16xf32>, vector<16x128xf32>, vector<2x128xf32> -> vector<2x128xf32>
    %cst_34 = arith.constant dense<0.000000e+00> : vector<2x128xf32>
    %43 = tpu.matmul %34, %25, %cst_34 {dimension_numbers = #tpu.dot_dimension_numbers<[1], [0], [0], [1], [0, 0, 1, 1], [], []>} : vector<2x32xf32>, vector<32x128xf32>, vector<2x128xf32> -> vector<2x128xf32>
    %44 = arith.addf %42, %43 : vector<2x128xf32>
    %45 = arith.addf %44, %29 : vector<2x128xf32>
    %46 = arith.negf %45 : vector<2x128xf32>
    %47 = math.exp %46 : vector<2x128xf32>
    %cst_35 = arith.constant 1.000000e+00 : f32
    %48 = vector.broadcast %cst_35 : f32 to vector<2x128xf32>
    %49 = arith.addf %48, %47 : vector<2x128xf32>
    %50 = arith.divf %48, %49 : vector<2x128xf32>
    %51 = vector.extract_strided_slice %50 {offsets = [0, 0], sizes = [2, 32], strides = [1, 1]} : vector<2x128xf32> to vector<2x32xf32>
    %52 = vector.extract_strided_slice %50 {offsets = [0, 32], sizes = [2, 32], strides = [1, 1]} : vector<2x128xf32> to vector<2x32xf32>
    %53 = vector.extract_strided_slice %50 {offsets = [0, 96], sizes = [2, 32], strides = [1, 1]} : vector<2x128xf32> to vector<2x32xf32>
    %54 = vector.extract_strided_slice %45 {offsets = [0, 64], sizes = [2, 32], strides = [1, 1]} : vector<2x128xf32> to vector<2x32xf32>
    %55 = math.tanh %54 : vector<2x32xf32>
    %56 = arith.mulf %52, %38 : vector<2x32xf32>
    %57 = arith.mulf %51, %55 : vector<2x32xf32>
    %58 = arith.addf %56, %57 : vector<2x32xf32>
    %59 = math.tanh %58 : vector<2x32xf32>
    %60 = arith.mulf %53, %59 : vector<2x32xf32>
    %cst_36 = arith.constant dense<0.000000e+00> : vector<2x128xf32>
    %61 = tpu.matmul %60, %24, %cst_36 {dimension_numbers = #tpu.dot_dimension_numbers<[1], [0], [0], [1], [0, 0, 1, 1], [], []>} : vector<2x32xf32>, vector<32x128xf32>, vector<2x128xf32> -> vector<2x128xf32>
    %cst_37 = arith.constant dense<0.000000e+00> : vector<2x128xf32>
    %62 = tpu.matmul %36, %26, %cst_37 {dimension_numbers = #tpu.dot_dimension_numbers<[1], [0], [0], [1], [0, 0, 1, 1], [], []>} : vector<2x32xf32>, vector<32x128xf32>, vector<2x128xf32> -> vector<2x128xf32>
    %63 = arith.addf %61, %62 : vector<2x128xf32>
    %64 = arith.addf %63, %32 : vector<2x128xf32>
    %65 = arith.negf %64 : vector<2x128xf32>
    %66 = math.exp %65 : vector<2x128xf32>
    %cst_38 = arith.constant 1.000000e+00 : f32
    %67 = vector.broadcast %cst_38 : f32 to vector<2x128xf32>
    %68 = arith.addf %67, %66 : vector<2x128xf32>
    %69 = arith.divf %67, %68 : vector<2x128xf32>
    %70 = vector.extract_strided_slice %69 {offsets = [0, 0], sizes = [2, 32], strides = [1, 1]} : vector<2x128xf32> to vector<2x32xf32>
    %71 = vector.extract_strided_slice %69 {offsets = [0, 32], sizes = [2, 32], strides = [1, 1]} : vector<2x128xf32> to vector<2x32xf32>
    %72 = vector.extract_strided_slice %69 {offsets = [0, 96], sizes = [2, 32], strides = [1, 1]} : vector<2x128xf32> to vector<2x32xf32>
    %73 = vector.extract_strided_slice %64 {offsets = [0, 64], sizes = [2, 32], strides = [1, 1]} : vector<2x128xf32> to vector<2x32xf32>
    %74 = math.tanh %73 : vector<2x32xf32>
    %75 = arith.mulf %71, %40 : vector<2x32xf32>
    %76 = arith.mulf %70, %74 : vector<2x32xf32>
    %77 = arith.addf %75, %76 : vector<2x32xf32>
    %78 = math.tanh %77 : vector<2x32xf32>
    %79 = arith.mulf %72, %78 : vector<2x32xf32>
    %80 = vector.extract_strided_slice %22 {offsets = [2, 0], sizes = [2, 16], strides = [1, 1]} : vector<16x16xf32> to vector<2x16xf32>
    %cst_39 = arith.constant dense<0.000000e+00> : vector<2x128xf32>
    %81 = tpu.matmul %80, %23, %cst_39 {dimension_numbers = #tpu.dot_dimension_numbers<[1], [0], [0], [1], [0, 0, 1, 1], [], []>} : vector<2x16xf32>, vector<16x128xf32>, vector<2x128xf32> -> vector<2x128xf32>
    %cst_40 = arith.constant dense<0.000000e+00> : vector<2x128xf32>
    %82 = tpu.matmul %60, %25, %cst_40 {dimension_numbers = #tpu.dot_dimension_numbers<[1], [0], [0], [1], [0, 0, 1, 1], [], []>} : vector<2x32xf32>, vector<32x128xf32>, vector<2x128xf32> -> vector<2x128xf32>
    %83 = arith.addf %81, %82 : vector<2x128xf32>
    %84 = arith.addf %83, %29 : vector<2x128xf32>
    %85 = arith.negf %84 : vector<2x128xf32>
    %86 = math.exp %85 : vector<2x128xf32>
    %cst_41 = arith.constant 1.000000e+00 : f32
    %87 = vector.broadcast %cst_41 : f32 to vector<2x128xf32>
    %88 = arith.addf %87, %86 : vector<2x128xf32>
    %89 = arith.divf %87, %88 : vector<2x128xf32>
    %90 = vector.extract_strided_slice %89 {offsets = [0, 0], sizes = [2, 32], strides = [1, 1]} : vector<2x128xf32> to vector<2x32xf32>
    %91 = vector.extract_strided_slice %89 {offsets = [0, 32], sizes = [2, 32], strides = [1, 1]} : vector<2x128xf32> to vector<2x32xf32>
    %92 = vector.extract_strided_slice %89 {offsets = [0, 96], sizes = [2, 32], strides = [1, 1]} : vector<2x128xf32> to vector<2x32xf32>
    %93 = vector.extract_strided_slice %84 {offsets = [0, 64], sizes = [2, 32], strides = [1, 1]} : vector<2x128xf32> to vector<2x32xf32>
    %94 = math.tanh %93 : vector<2x32xf32>
    %95 = arith.mulf %91, %58 : vector<2x32xf32>
    %96 = arith.mulf %90, %94 : vector<2x32xf32>
    %97 = arith.addf %95, %96 : vector<2x32xf32>
    %98 = math.tanh %97 : vector<2x32xf32>
    %99 = arith.mulf %92, %98 : vector<2x32xf32>
    %cst_42 = arith.constant dense<0.000000e+00> : vector<2x128xf32>
    %100 = tpu.matmul %99, %24, %cst_42 {dimension_numbers = #tpu.dot_dimension_numbers<[1], [0], [0], [1], [0, 0, 1, 1], [], []>} : vector<2x32xf32>, vector<32x128xf32>, vector<2x128xf32> -> vector<2x128xf32>
    %cst_43 = arith.constant dense<0.000000e+00> : vector<2x128xf32>
    %101 = tpu.matmul %79, %26, %cst_43 {dimension_numbers = #tpu.dot_dimension_numbers<[1], [0], [0], [1], [0, 0, 1, 1], [], []>} : vector<2x32xf32>, vector<32x128xf32>, vector<2x128xf32> -> vector<2x128xf32>
    %102 = arith.addf %100, %101 : vector<2x128xf32>
    %103 = arith.addf %102, %32 : vector<2x128xf32>
    %104 = arith.negf %103 : vector<2x128xf32>
    %105 = math.exp %104 : vector<2x128xf32>
    %cst_44 = arith.constant 1.000000e+00 : f32
    %106 = vector.broadcast %cst_44 : f32 to vector<2x128xf32>
    %107 = arith.addf %106, %105 : vector<2x128xf32>
    %108 = arith.divf %106, %107 : vector<2x128xf32>
    %109 = vector.extract_strided_slice %108 {offsets = [0, 0], sizes = [2, 32], strides = [1, 1]} : vector<2x128xf32> to vector<2x32xf32>
    %110 = vector.extract_strided_slice %108 {offsets = [0, 32], sizes = [2, 32], strides = [1, 1]} : vector<2x128xf32> to vector<2x32xf32>
    %111 = vector.extract_strided_slice %108 {offsets = [0, 96], sizes = [2, 32], strides = [1, 1]} : vector<2x128xf32> to vector<2x32xf32>
    %112 = vector.extract_strided_slice %103 {offsets = [0, 64], sizes = [2, 32], strides = [1, 1]} : vector<2x128xf32> to vector<2x32xf32>
    %113 = math.tanh %112 : vector<2x32xf32>
    %114 = arith.mulf %110, %77 : vector<2x32xf32>
    %115 = arith.mulf %109, %113 : vector<2x32xf32>
    %116 = arith.addf %114, %115 : vector<2x32xf32>
    %117 = math.tanh %116 : vector<2x32xf32>
    %118 = arith.mulf %111, %117 : vector<2x32xf32>
    %119 = vector.extract_strided_slice %22 {offsets = [4, 0], sizes = [2, 16], strides = [1, 1]} : vector<16x16xf32> to vector<2x16xf32>
    %cst_45 = arith.constant dense<0.000000e+00> : vector<2x128xf32>
    %120 = tpu.matmul %119, %23, %cst_45 {dimension_numbers = #tpu.dot_dimension_numbers<[1], [0], [0], [1], [0, 0, 1, 1], [], []>} : vector<2x16xf32>, vector<16x128xf32>, vector<2x128xf32> -> vector<2x128xf32>
    %cst_46 = arith.constant dense<0.000000e+00> : vector<2x128xf32>
    %121 = tpu.matmul %99, %25, %cst_46 {dimension_numbers = #tpu.dot_dimension_numbers<[1], [0], [0], [1], [0, 0, 1, 1], [], []>} : vector<2x32xf32>, vector<32x128xf32>, vector<2x128xf32> -> vector<2x128xf32>
    %122 = arith.addf %120, %121 : vector<2x128xf32>
    %123 = arith.addf %122, %29 : vector<2x128xf32>
    %124 = arith.negf %123 : vector<2x128xf32>
    %125 = math.exp %124 : vector<2x128xf32>
    %cst_47 = arith.constant 1.000000e+00 : f32
    %126 = vector.broadcast %cst_47 : f32 to vector<2x128xf32>
    %127 = arith.addf %126, %125 : vector<2x128xf32>
    %128 = arith.divf %126, %127 : vector<2x128xf32>
    %129 = vector.extract_strided_slice %128 {offsets = [0, 0], sizes = [2, 32], strides = [1, 1]} : vector<2x128xf32> to vector<2x32xf32>
    %130 = vector.extract_strided_slice %128 {offsets = [0, 32], sizes = [2, 32], strides = [1, 1]} : vector<2x128xf32> to vector<2x32xf32>
    %131 = vector.extract_strided_slice %128 {offsets = [0, 96], sizes = [2, 32], strides = [1, 1]} : vector<2x128xf32> to vector<2x32xf32>
    %132 = vector.extract_strided_slice %123 {offsets = [0, 64], sizes = [2, 32], strides = [1, 1]} : vector<2x128xf32> to vector<2x32xf32>
    %133 = math.tanh %132 : vector<2x32xf32>
    %134 = arith.mulf %130, %97 : vector<2x32xf32>
    %135 = arith.mulf %129, %133 : vector<2x32xf32>
    %136 = arith.addf %134, %135 : vector<2x32xf32>
    %137 = math.tanh %136 : vector<2x32xf32>
    %138 = arith.mulf %131, %137 : vector<2x32xf32>
    %cst_48 = arith.constant dense<0.000000e+00> : vector<2x128xf32>
    %139 = tpu.matmul %138, %24, %cst_48 {dimension_numbers = #tpu.dot_dimension_numbers<[1], [0], [0], [1], [0, 0, 1, 1], [], []>} : vector<2x32xf32>, vector<32x128xf32>, vector<2x128xf32> -> vector<2x128xf32>
    %cst_49 = arith.constant dense<0.000000e+00> : vector<2x128xf32>
    %140 = tpu.matmul %118, %26, %cst_49 {dimension_numbers = #tpu.dot_dimension_numbers<[1], [0], [0], [1], [0, 0, 1, 1], [], []>} : vector<2x32xf32>, vector<32x128xf32>, vector<2x128xf32> -> vector<2x128xf32>
    %141 = arith.addf %139, %140 : vector<2x128xf32>
    %142 = arith.addf %141, %32 : vector<2x128xf32>
    %143 = arith.negf %142 : vector<2x128xf32>
    %144 = math.exp %143 : vector<2x128xf32>
    %cst_50 = arith.constant 1.000000e+00 : f32
    %145 = vector.broadcast %cst_50 : f32 to vector<2x128xf32>
    %146 = arith.addf %145, %144 : vector<2x128xf32>
    %147 = arith.divf %145, %146 : vector<2x128xf32>
    %148 = vector.extract_strided_slice %147 {offsets = [0, 0], sizes = [2, 32], strides = [1, 1]} : vector<2x128xf32> to vector<2x32xf32>
    %149 = vector.extract_strided_slice %147 {offsets = [0, 32], sizes = [2, 32], strides = [1, 1]} : vector<2x128xf32> to vector<2x32xf32>
    %150 = vector.extract_strided_slice %147 {offsets = [0, 96], sizes = [2, 32], strides = [1, 1]} : vector<2x128xf32> to vector<2x32xf32>
    %151 = vector.extract_strided_slice %142 {offsets = [0, 64], sizes = [2, 32], strides = [1, 1]} : vector<2x128xf32> to vector<2x32xf32>
    %152 = math.tanh %151 : vector<2x32xf32>
    %153 = arith.mulf %149, %116 : vector<2x32xf32>
    %154 = arith.mulf %148, %152 : vector<2x32xf32>
    %155 = arith.addf %153, %154 : vector<2x32xf32>
    %156 = math.tanh %155 : vector<2x32xf32>
    %157 = arith.mulf %150, %156 : vector<2x32xf32>
    %158 = vector.extract_strided_slice %22 {offsets = [6, 0], sizes = [2, 16], strides = [1, 1]} : vector<16x16xf32> to vector<2x16xf32>
    %cst_51 = arith.constant dense<0.000000e+00> : vector<2x128xf32>
    %159 = tpu.matmul %158, %23, %cst_51 {dimension_numbers = #tpu.dot_dimension_numbers<[1], [0], [0], [1], [0, 0, 1, 1], [], []>} : vector<2x16xf32>, vector<16x128xf32>, vector<2x128xf32> -> vector<2x128xf32>
    %cst_52 = arith.constant dense<0.000000e+00> : vector<2x128xf32>
    %160 = tpu.matmul %138, %25, %cst_52 {dimension_numbers = #tpu.dot_dimension_numbers<[1], [0], [0], [1], [0, 0, 1, 1], [], []>} : vector<2x32xf32>, vector<32x128xf32>, vector<2x128xf32> -> vector<2x128xf32>
    %161 = arith.addf %159, %160 : vector<2x128xf32>
    %162 = arith.addf %161, %29 : vector<2x128xf32>
    %163 = arith.negf %162 : vector<2x128xf32>
    %164 = math.exp %163 : vector<2x128xf32>
    %cst_53 = arith.constant 1.000000e+00 : f32
    %165 = vector.broadcast %cst_53 : f32 to vector<2x128xf32>
    %166 = arith.addf %165, %164 : vector<2x128xf32>
    %167 = arith.divf %165, %166 : vector<2x128xf32>
    %168 = vector.extract_strided_slice %167 {offsets = [0, 0], sizes = [2, 32], strides = [1, 1]} : vector<2x128xf32> to vector<2x32xf32>
    %169 = vector.extract_strided_slice %167 {offsets = [0, 32], sizes = [2, 32], strides = [1, 1]} : vector<2x128xf32> to vector<2x32xf32>
    %170 = vector.extract_strided_slice %167 {offsets = [0, 96], sizes = [2, 32], strides = [1, 1]} : vector<2x128xf32> to vector<2x32xf32>
    %171 = vector.extract_strided_slice %162 {offsets = [0, 64], sizes = [2, 32], strides = [1, 1]} : vector<2x128xf32> to vector<2x32xf32>
    %172 = math.tanh %171 : vector<2x32xf32>
    %173 = arith.mulf %169, %136 : vector<2x32xf32>
    %174 = arith.mulf %168, %172 : vector<2x32xf32>
    %175 = arith.addf %173, %174 : vector<2x32xf32>
    %176 = math.tanh %175 : vector<2x32xf32>
    %177 = arith.mulf %170, %176 : vector<2x32xf32>
    %cst_54 = arith.constant dense<0.000000e+00> : vector<2x128xf32>
    %178 = tpu.matmul %177, %24, %cst_54 {dimension_numbers = #tpu.dot_dimension_numbers<[1], [0], [0], [1], [0, 0, 1, 1], [], []>} : vector<2x32xf32>, vector<32x128xf32>, vector<2x128xf32> -> vector<2x128xf32>
    %cst_55 = arith.constant dense<0.000000e+00> : vector<2x128xf32>
    %179 = tpu.matmul %157, %26, %cst_55 {dimension_numbers = #tpu.dot_dimension_numbers<[1], [0], [0], [1], [0, 0, 1, 1], [], []>} : vector<2x32xf32>, vector<32x128xf32>, vector<2x128xf32> -> vector<2x128xf32>
    %180 = arith.addf %178, %179 : vector<2x128xf32>
    %181 = arith.addf %180, %32 : vector<2x128xf32>
    %182 = arith.negf %181 : vector<2x128xf32>
    %183 = math.exp %182 : vector<2x128xf32>
    %cst_56 = arith.constant 1.000000e+00 : f32
    %184 = vector.broadcast %cst_56 : f32 to vector<2x128xf32>
    %185 = arith.addf %184, %183 : vector<2x128xf32>
    %186 = arith.divf %184, %185 : vector<2x128xf32>
    %187 = vector.extract_strided_slice %186 {offsets = [0, 0], sizes = [2, 32], strides = [1, 1]} : vector<2x128xf32> to vector<2x32xf32>
    %188 = vector.extract_strided_slice %186 {offsets = [0, 32], sizes = [2, 32], strides = [1, 1]} : vector<2x128xf32> to vector<2x32xf32>
    %189 = vector.extract_strided_slice %186 {offsets = [0, 96], sizes = [2, 32], strides = [1, 1]} : vector<2x128xf32> to vector<2x32xf32>
    %190 = vector.extract_strided_slice %181 {offsets = [0, 64], sizes = [2, 32], strides = [1, 1]} : vector<2x128xf32> to vector<2x32xf32>
    %191 = math.tanh %190 : vector<2x32xf32>
    %192 = arith.mulf %188, %155 : vector<2x32xf32>
    %193 = arith.mulf %187, %191 : vector<2x32xf32>
    %194 = arith.addf %192, %193 : vector<2x32xf32>
    %195 = math.tanh %194 : vector<2x32xf32>
    %196 = arith.mulf %189, %195 : vector<2x32xf32>
    %197 = vector.extract_strided_slice %22 {offsets = [8, 0], sizes = [2, 16], strides = [1, 1]} : vector<16x16xf32> to vector<2x16xf32>
    %cst_57 = arith.constant dense<0.000000e+00> : vector<2x128xf32>
    %198 = tpu.matmul %197, %23, %cst_57 {dimension_numbers = #tpu.dot_dimension_numbers<[1], [0], [0], [1], [0, 0, 1, 1], [], []>} : vector<2x16xf32>, vector<16x128xf32>, vector<2x128xf32> -> vector<2x128xf32>
    %cst_58 = arith.constant dense<0.000000e+00> : vector<2x128xf32>
    %199 = tpu.matmul %177, %25, %cst_58 {dimension_numbers = #tpu.dot_dimension_numbers<[1], [0], [0], [1], [0, 0, 1, 1], [], []>} : vector<2x32xf32>, vector<32x128xf32>, vector<2x128xf32> -> vector<2x128xf32>
    %200 = arith.addf %198, %199 : vector<2x128xf32>
    %201 = arith.addf %200, %29 : vector<2x128xf32>
    %202 = arith.negf %201 : vector<2x128xf32>
    %203 = math.exp %202 : vector<2x128xf32>
    %cst_59 = arith.constant 1.000000e+00 : f32
    %204 = vector.broadcast %cst_59 : f32 to vector<2x128xf32>
    %205 = arith.addf %204, %203 : vector<2x128xf32>
    %206 = arith.divf %204, %205 : vector<2x128xf32>
    %207 = vector.extract_strided_slice %206 {offsets = [0, 0], sizes = [2, 32], strides = [1, 1]} : vector<2x128xf32> to vector<2x32xf32>
    %208 = vector.extract_strided_slice %206 {offsets = [0, 32], sizes = [2, 32], strides = [1, 1]} : vector<2x128xf32> to vector<2x32xf32>
    %209 = vector.extract_strided_slice %206 {offsets = [0, 96], sizes = [2, 32], strides = [1, 1]} : vector<2x128xf32> to vector<2x32xf32>
    %210 = vector.extract_strided_slice %201 {offsets = [0, 64], sizes = [2, 32], strides = [1, 1]} : vector<2x128xf32> to vector<2x32xf32>
    %211 = math.tanh %210 : vector<2x32xf32>
    %212 = arith.mulf %208, %175 : vector<2x32xf32>
    %213 = arith.mulf %207, %211 : vector<2x32xf32>
    %214 = arith.addf %212, %213 : vector<2x32xf32>
    %215 = math.tanh %214 : vector<2x32xf32>
    %216 = arith.mulf %209, %215 : vector<2x32xf32>
    %cst_60 = arith.constant dense<0.000000e+00> : vector<2x128xf32>
    %217 = tpu.matmul %216, %24, %cst_60 {dimension_numbers = #tpu.dot_dimension_numbers<[1], [0], [0], [1], [0, 0, 1, 1], [], []>} : vector<2x32xf32>, vector<32x128xf32>, vector<2x128xf32> -> vector<2x128xf32>
    %cst_61 = arith.constant dense<0.000000e+00> : vector<2x128xf32>
    %218 = tpu.matmul %196, %26, %cst_61 {dimension_numbers = #tpu.dot_dimension_numbers<[1], [0], [0], [1], [0, 0, 1, 1], [], []>} : vector<2x32xf32>, vector<32x128xf32>, vector<2x128xf32> -> vector<2x128xf32>
    %219 = arith.addf %217, %218 : vector<2x128xf32>
    %220 = arith.addf %219, %32 : vector<2x128xf32>
    %221 = arith.negf %220 : vector<2x128xf32>
    %222 = math.exp %221 : vector<2x128xf32>
    %cst_62 = arith.constant 1.000000e+00 : f32
    %223 = vector.broadcast %cst_62 : f32 to vector<2x128xf32>
    %224 = arith.addf %223, %222 : vector<2x128xf32>
    %225 = arith.divf %223, %224 : vector<2x128xf32>
    %226 = vector.extract_strided_slice %225 {offsets = [0, 0], sizes = [2, 32], strides = [1, 1]} : vector<2x128xf32> to vector<2x32xf32>
    %227 = vector.extract_strided_slice %225 {offsets = [0, 32], sizes = [2, 32], strides = [1, 1]} : vector<2x128xf32> to vector<2x32xf32>
    %228 = vector.extract_strided_slice %225 {offsets = [0, 96], sizes = [2, 32], strides = [1, 1]} : vector<2x128xf32> to vector<2x32xf32>
    %229 = vector.extract_strided_slice %220 {offsets = [0, 64], sizes = [2, 32], strides = [1, 1]} : vector<2x128xf32> to vector<2x32xf32>
    %230 = math.tanh %229 : vector<2x32xf32>
    %231 = arith.mulf %227, %194 : vector<2x32xf32>
    %232 = arith.mulf %226, %230 : vector<2x32xf32>
    %233 = arith.addf %231, %232 : vector<2x32xf32>
    %234 = math.tanh %233 : vector<2x32xf32>
    %235 = arith.mulf %228, %234 : vector<2x32xf32>
    %236 = vector.extract_strided_slice %22 {offsets = [10, 0], sizes = [2, 16], strides = [1, 1]} : vector<16x16xf32> to vector<2x16xf32>
    %cst_63 = arith.constant dense<0.000000e+00> : vector<2x128xf32>
    %237 = tpu.matmul %236, %23, %cst_63 {dimension_numbers = #tpu.dot_dimension_numbers<[1], [0], [0], [1], [0, 0, 1, 1], [], []>} : vector<2x16xf32>, vector<16x128xf32>, vector<2x128xf32> -> vector<2x128xf32>
    %cst_64 = arith.constant dense<0.000000e+00> : vector<2x128xf32>
    %238 = tpu.matmul %216, %25, %cst_64 {dimension_numbers = #tpu.dot_dimension_numbers<[1], [0], [0], [1], [0, 0, 1, 1], [], []>} : vector<2x32xf32>, vector<32x128xf32>, vector<2x128xf32> -> vector<2x128xf32>
    %239 = arith.addf %237, %238 : vector<2x128xf32>
    %240 = arith.addf %239, %29 : vector<2x128xf32>
    %241 = arith.negf %240 : vector<2x128xf32>
    %242 = math.exp %241 : vector<2x128xf32>
    %cst_65 = arith.constant 1.000000e+00 : f32
    %243 = vector.broadcast %cst_65 : f32 to vector<2x128xf32>
    %244 = arith.addf %243, %242 : vector<2x128xf32>
    %245 = arith.divf %243, %244 : vector<2x128xf32>
    %246 = vector.extract_strided_slice %245 {offsets = [0, 0], sizes = [2, 32], strides = [1, 1]} : vector<2x128xf32> to vector<2x32xf32>
    %247 = vector.extract_strided_slice %245 {offsets = [0, 32], sizes = [2, 32], strides = [1, 1]} : vector<2x128xf32> to vector<2x32xf32>
    %248 = vector.extract_strided_slice %245 {offsets = [0, 96], sizes = [2, 32], strides = [1, 1]} : vector<2x128xf32> to vector<2x32xf32>
    %249 = vector.extract_strided_slice %240 {offsets = [0, 64], sizes = [2, 32], strides = [1, 1]} : vector<2x128xf32> to vector<2x32xf32>
    %250 = math.tanh %249 : vector<2x32xf32>
    %251 = arith.mulf %247, %214 : vector<2x32xf32>
    %252 = arith.mulf %246, %250 : vector<2x32xf32>
    %253 = arith.addf %251, %252 : vector<2x32xf32>
    %254 = math.tanh %253 : vector<2x32xf32>
    %255 = arith.mulf %248, %254 : vector<2x32xf32>
    %cst_66 = arith.constant dense<0.000000e+00> : vector<2x128xf32>
    %256 = tpu.matmul %255, %24, %cst_66 {dimension_numbers = #tpu.dot_dimension_numbers<[1], [0], [0], [1], [0, 0, 1, 1], [], []>} : vector<2x32xf32>, vector<32x128xf32>, vector<2x128xf32> -> vector<2x128xf32>
    %cst_67 = arith.constant dense<0.000000e+00> : vector<2x128xf32>
    %257 = tpu.matmul %235, %26, %cst_67 {dimension_numbers = #tpu.dot_dimension_numbers<[1], [0], [0], [1], [0, 0, 1, 1], [], []>} : vector<2x32xf32>, vector<32x128xf32>, vector<2x128xf32> -> vector<2x128xf32>
    %258 = arith.addf %256, %257 : vector<2x128xf32>
    %259 = arith.addf %258, %32 : vector<2x128xf32>
    %260 = arith.negf %259 : vector<2x128xf32>
    %261 = math.exp %260 : vector<2x128xf32>
    %cst_68 = arith.constant 1.000000e+00 : f32
    %262 = vector.broadcast %cst_68 : f32 to vector<2x128xf32>
    %263 = arith.addf %262, %261 : vector<2x128xf32>
    %264 = arith.divf %262, %263 : vector<2x128xf32>
    %265 = vector.extract_strided_slice %264 {offsets = [0, 0], sizes = [2, 32], strides = [1, 1]} : vector<2x128xf32> to vector<2x32xf32>
    %266 = vector.extract_strided_slice %264 {offsets = [0, 32], sizes = [2, 32], strides = [1, 1]} : vector<2x128xf32> to vector<2x32xf32>
    %267 = vector.extract_strided_slice %264 {offsets = [0, 96], sizes = [2, 32], strides = [1, 1]} : vector<2x128xf32> to vector<2x32xf32>
    %268 = vector.extract_strided_slice %259 {offsets = [0, 64], sizes = [2, 32], strides = [1, 1]} : vector<2x128xf32> to vector<2x32xf32>
    %269 = math.tanh %268 : vector<2x32xf32>
    %270 = arith.mulf %266, %233 : vector<2x32xf32>
    %271 = arith.mulf %265, %269 : vector<2x32xf32>
    %272 = arith.addf %270, %271 : vector<2x32xf32>
    %273 = math.tanh %272 : vector<2x32xf32>
    %274 = arith.mulf %267, %273 : vector<2x32xf32>
    %275 = vector.extract_strided_slice %22 {offsets = [12, 0], sizes = [2, 16], strides = [1, 1]} : vector<16x16xf32> to vector<2x16xf32>
    %cst_69 = arith.constant dense<0.000000e+00> : vector<2x128xf32>
    %276 = tpu.matmul %275, %23, %cst_69 {dimension_numbers = #tpu.dot_dimension_numbers<[1], [0], [0], [1], [0, 0, 1, 1], [], []>} : vector<2x16xf32>, vector<16x128xf32>, vector<2x128xf32> -> vector<2x128xf32>
    %cst_70 = arith.constant dense<0.000000e+00> : vector<2x128xf32>
    %277 = tpu.matmul %255, %25, %cst_70 {dimension_numbers = #tpu.dot_dimension_numbers<[1], [0], [0], [1], [0, 0, 1, 1], [], []>} : vector<2x32xf32>, vector<32x128xf32>, vector<2x128xf32> -> vector<2x128xf32>
    %278 = arith.addf %276, %277 : vector<2x128xf32>
    %279 = arith.addf %278, %29 : vector<2x128xf32>
    %280 = arith.negf %279 : vector<2x128xf32>
    %281 = math.exp %280 : vector<2x128xf32>
    %cst_71 = arith.constant 1.000000e+00 : f32
    %282 = vector.broadcast %cst_71 : f32 to vector<2x128xf32>
    %283 = arith.addf %282, %281 : vector<2x128xf32>
    %284 = arith.divf %282, %283 : vector<2x128xf32>
    %285 = vector.extract_strided_slice %284 {offsets = [0, 0], sizes = [2, 32], strides = [1, 1]} : vector<2x128xf32> to vector<2x32xf32>
    %286 = vector.extract_strided_slice %284 {offsets = [0, 32], sizes = [2, 32], strides = [1, 1]} : vector<2x128xf32> to vector<2x32xf32>
    %287 = vector.extract_strided_slice %284 {offsets = [0, 96], sizes = [2, 32], strides = [1, 1]} : vector<2x128xf32> to vector<2x32xf32>
    %288 = vector.extract_strided_slice %279 {offsets = [0, 64], sizes = [2, 32], strides = [1, 1]} : vector<2x128xf32> to vector<2x32xf32>
    %289 = math.tanh %288 : vector<2x32xf32>
    %290 = arith.mulf %286, %253 : vector<2x32xf32>
    %291 = arith.mulf %285, %289 : vector<2x32xf32>
    %292 = arith.addf %290, %291 : vector<2x32xf32>
    %293 = math.tanh %292 : vector<2x32xf32>
    %294 = arith.mulf %287, %293 : vector<2x32xf32>
    %cst_72 = arith.constant dense<0.000000e+00> : vector<2x128xf32>
    %295 = tpu.matmul %294, %24, %cst_72 {dimension_numbers = #tpu.dot_dimension_numbers<[1], [0], [0], [1], [0, 0, 1, 1], [], []>} : vector<2x32xf32>, vector<32x128xf32>, vector<2x128xf32> -> vector<2x128xf32>
    %cst_73 = arith.constant dense<0.000000e+00> : vector<2x128xf32>
    %296 = tpu.matmul %274, %26, %cst_73 {dimension_numbers = #tpu.dot_dimension_numbers<[1], [0], [0], [1], [0, 0, 1, 1], [], []>} : vector<2x32xf32>, vector<32x128xf32>, vector<2x128xf32> -> vector<2x128xf32>
    %297 = arith.addf %295, %296 : vector<2x128xf32>
    %298 = arith.addf %297, %32 : vector<2x128xf32>
    %299 = arith.negf %298 : vector<2x128xf32>
    %300 = math.exp %299 : vector<2x128xf32>
    %cst_74 = arith.constant 1.000000e+00 : f32
    %301 = vector.broadcast %cst_74 : f32 to vector<2x128xf32>
    %302 = arith.addf %301, %300 : vector<2x128xf32>
    %303 = arith.divf %301, %302 : vector<2x128xf32>
    %304 = vector.extract_strided_slice %303 {offsets = [0, 0], sizes = [2, 32], strides = [1, 1]} : vector<2x128xf32> to vector<2x32xf32>
    %305 = vector.extract_strided_slice %303 {offsets = [0, 32], sizes = [2, 32], strides = [1, 1]} : vector<2x128xf32> to vector<2x32xf32>
    %306 = vector.extract_strided_slice %303 {offsets = [0, 96], sizes = [2, 32], strides = [1, 1]} : vector<2x128xf32> to vector<2x32xf32>
    %307 = vector.extract_strided_slice %298 {offsets = [0, 64], sizes = [2, 32], strides = [1, 1]} : vector<2x128xf32> to vector<2x32xf32>
    %308 = math.tanh %307 : vector<2x32xf32>
    %309 = arith.mulf %305, %272 : vector<2x32xf32>
    %310 = arith.mulf %304, %308 : vector<2x32xf32>
    %311 = arith.addf %309, %310 : vector<2x32xf32>
    %312 = math.tanh %311 : vector<2x32xf32>
    %313 = arith.mulf %306, %312 : vector<2x32xf32>
    %314 = vector.extract_strided_slice %22 {offsets = [14, 0], sizes = [2, 16], strides = [1, 1]} : vector<16x16xf32> to vector<2x16xf32>
    %cst_75 = arith.constant dense<0.000000e+00> : vector<2x128xf32>
    %315 = tpu.matmul %314, %23, %cst_75 {dimension_numbers = #tpu.dot_dimension_numbers<[1], [0], [0], [1], [0, 0, 1, 1], [], []>} : vector<2x16xf32>, vector<16x128xf32>, vector<2x128xf32> -> vector<2x128xf32>
    %cst_76 = arith.constant dense<0.000000e+00> : vector<2x128xf32>
    %316 = tpu.matmul %294, %25, %cst_76 {dimension_numbers = #tpu.dot_dimension_numbers<[1], [0], [0], [1], [0, 0, 1, 1], [], []>} : vector<2x32xf32>, vector<32x128xf32>, vector<2x128xf32> -> vector<2x128xf32>
    %317 = arith.addf %315, %316 : vector<2x128xf32>
    %318 = arith.addf %317, %29 : vector<2x128xf32>
    %319 = arith.negf %318 : vector<2x128xf32>
    %320 = math.exp %319 : vector<2x128xf32>
    %cst_77 = arith.constant 1.000000e+00 : f32
    %321 = vector.broadcast %cst_77 : f32 to vector<2x128xf32>
    %322 = arith.addf %321, %320 : vector<2x128xf32>
    %323 = arith.divf %321, %322 : vector<2x128xf32>
    %324 = vector.extract_strided_slice %323 {offsets = [0, 0], sizes = [2, 32], strides = [1, 1]} : vector<2x128xf32> to vector<2x32xf32>
    %325 = vector.extract_strided_slice %323 {offsets = [0, 32], sizes = [2, 32], strides = [1, 1]} : vector<2x128xf32> to vector<2x32xf32>
    %326 = vector.extract_strided_slice %323 {offsets = [0, 96], sizes = [2, 32], strides = [1, 1]} : vector<2x128xf32> to vector<2x32xf32>
    %327 = vector.extract_strided_slice %318 {offsets = [0, 64], sizes = [2, 32], strides = [1, 1]} : vector<2x128xf32> to vector<2x32xf32>
    %328 = math.tanh %327 : vector<2x32xf32>
    %329 = arith.mulf %325, %292 : vector<2x32xf32>
    %330 = arith.mulf %324, %328 : vector<2x32xf32>
    %331 = arith.addf %329, %330 : vector<2x32xf32>
    %332 = math.tanh %331 : vector<2x32xf32>
    %333 = arith.mulf %326, %332 : vector<2x32xf32>
    %cst_78 = arith.constant dense<0.000000e+00> : vector<2x128xf32>
    %334 = tpu.matmul %333, %24, %cst_78 {dimension_numbers = #tpu.dot_dimension_numbers<[1], [0], [0], [1], [0, 0, 1, 1], [], []>} : vector<2x32xf32>, vector<32x128xf32>, vector<2x128xf32> -> vector<2x128xf32>
    %cst_79 = arith.constant dense<0.000000e+00> : vector<2x128xf32>
    %335 = tpu.matmul %313, %26, %cst_79 {dimension_numbers = #tpu.dot_dimension_numbers<[1], [0], [0], [1], [0, 0, 1, 1], [], []>} : vector<2x32xf32>, vector<32x128xf32>, vector<2x128xf32> -> vector<2x128xf32>
    %336 = arith.addf %334, %335 : vector<2x128xf32>
    %337 = arith.addf %336, %32 : vector<2x128xf32>
    %338 = arith.negf %337 : vector<2x128xf32>
    %339 = math.exp %338 : vector<2x128xf32>
    %cst_80 = arith.constant 1.000000e+00 : f32
    %340 = vector.broadcast %cst_80 : f32 to vector<2x128xf32>
    %341 = arith.addf %340, %339 : vector<2x128xf32>
    %342 = arith.divf %340, %341 : vector<2x128xf32>
    %343 = vector.extract_strided_slice %342 {offsets = [0, 0], sizes = [2, 32], strides = [1, 1]} : vector<2x128xf32> to vector<2x32xf32>
    %344 = vector.extract_strided_slice %342 {offsets = [0, 32], sizes = [2, 32], strides = [1, 1]} : vector<2x128xf32> to vector<2x32xf32>
    %345 = vector.extract_strided_slice %342 {offsets = [0, 96], sizes = [2, 32], strides = [1, 1]} : vector<2x128xf32> to vector<2x32xf32>
    %346 = vector.extract_strided_slice %337 {offsets = [0, 64], sizes = [2, 32], strides = [1, 1]} : vector<2x128xf32> to vector<2x32xf32>
    %347 = math.tanh %346 : vector<2x32xf32>
    %348 = arith.mulf %344, %311 : vector<2x32xf32>
    %349 = arith.mulf %343, %347 : vector<2x32xf32>
    %350 = arith.addf %348, %349 : vector<2x32xf32>
    %351 = math.tanh %350 : vector<2x32xf32>
    %352 = arith.mulf %345, %351 : vector<2x32xf32>
    %c0_81 = arith.constant 0 : index
    %c0_82 = arith.constant 0 : index
    %c0_83 = arith.constant 0 : index
    %353 = vector.load %arg15[%c0_81, %c0_82, %c0_83] : memref<2x2x32xf32, #tpu.memory_space<vmem>>, vector<1x2x32xf32>
    %354 = vector.shape_cast %353 : vector<1x2x32xf32> to vector<2x32xf32>
    %355 = vector.shape_cast %333 : vector<2x32xf32> to vector<1x2x32xf32>
    tpu.vector_store %arg15[%c0_81, %c0_82, %c0_83], %355 {strides = array<i32>} : memref<2x2x32xf32, #tpu.memory_space<vmem>>, vector<1x2x32xf32>,
    %c0_84 = arith.constant 0 : index
    %c0_85 = arith.constant 0 : index
    %c0_86 = arith.constant 0 : index
    %356 = vector.load %arg16[%c0_84, %c0_85, %c0_86] : memref<2x2x32xf32, #tpu.memory_space<vmem>>, vector<1x2x32xf32>
    %357 = vector.shape_cast %356 : vector<1x2x32xf32> to vector<2x32xf32>
    %358 = vector.shape_cast %331 : vector<2x32xf32> to vector<1x2x32xf32>
    tpu.vector_store %arg16[%c0_84, %c0_85, %c0_86], %358 {strides = array<i32>} : memref<2x2x32xf32, #tpu.memory_space<vmem>>, vector<1x2x32xf32>,
    %c1_87 = arith.constant 1 : index
    %c0_88 = arith.constant 0 : index
    %c0_89 = arith.constant 0 : index
    %359 = vector.load %arg15[%c1_87, %c0_88, %c0_89] : memref<2x2x32xf32, #tpu.memory_space<vmem>>, vector<1x2x32xf32>
    %360 = vector.shape_cast %359 : vector<1x2x32xf32> to vector<2x32xf32>
    %361 = vector.shape_cast %352 : vector<2x32xf32> to vector<1x2x32xf32>
    tpu.vector_store %arg15[%c1_87, %c0_88, %c0_89], %361 {strides = array<i32>} : memref<2x2x32xf32, #tpu.memory_space<vmem>>, vector<1x2x32xf32>,
    %c1_90 = arith.constant 1 : index
    %c0_91 = arith.constant 0 : index
    %c0_92 = arith.constant 0 : index
    %362 = vector.load %arg16[%c1_90, %c0_91, %c0_92] : memref<2x2x32xf32, #tpu.memory_space<vmem>>, vector<1x2x32xf32>
    %363 = vector.shape_cast %362 : vector<1x2x32xf32> to vector<2x32xf32>
    %364 = vector.shape_cast %350 : vector<2x32xf32> to vector<1x2x32xf32>
    tpu.vector_store %arg16[%c1_90, %c0_91, %c0_92], %364 {strides = array<i32>} : memref<2x2x32xf32, #tpu.memory_space<vmem>>, vector<1x2x32xf32>,
    %365 = arith.addf %333, %352 : vector<2x32xf32>
    %cst_93 = arith.constant 5.000000e-01 : f32
    %366 = vector.broadcast %cst_93 : f32 to vector<2x32xf32>
    %367 = arith.mulf %365, %366 : vector<2x32xf32>
    %c0_94 = arith.constant 0 : index
    %c0_95 = arith.constant 0 : index
    %368 = vector.load %arg10[%c0_94, %c0_95] : memref<32x64xf32, #tpu.memory_space<vmem>>, vector<32x64xf32>
    %cst_96 = arith.constant dense<0.000000e+00> : vector<2x64xf32>
    %369 = tpu.matmul %367, %368, %cst_96 {dimension_numbers = #tpu.dot_dimension_numbers<[1], [0], [0], [1], [0, 0, 1, 1], [], []>} : vector<2x32xf32>, vector<32x64xf32>, vector<2x64xf32> -> vector<2x64xf32>
    %c0_97 = arith.constant 0 : index
    %c0_98 = arith.constant 0 : index
    %370 = vector.load %arg11[%c0_97, %c0_98] : memref<1x64xf32, #tpu.memory_space<vmem>>, vector<1x64xf32>
    %371 = vector.broadcast %370 : vector<1x64xf32> to vector<2x64xf32>
    %372 = arith.addf %369, %371 : vector<2x64xf32>
    %c0_99 = arith.constant 0 : index
    %c0_100 = arith.constant 0 : index
    %373 = vector.load %arg12[%c0_99, %c0_100] : memref<64x32xf32, #tpu.memory_space<vmem>>, vector<64x32xf32>
    %cst_101 = arith.constant dense<0.000000e+00> : vector<2x32xf32>
    %374 = tpu.matmul %372, %373, %cst_101 {dimension_numbers = #tpu.dot_dimension_numbers<[1], [0], [0], [1], [0, 0, 1, 1], [], []>} : vector<2x64xf32>, vector<64x32xf32>, vector<2x32xf32> -> vector<2x32xf32>
    %c0_102 = arith.constant 0 : index
    %c0_103 = arith.constant 0 : index
    %375 = vector.load %arg13[%c0_102, %c0_103] : memref<1x32xf32, #tpu.memory_space<vmem>>, vector<1x32xf32>
    %376 = vector.broadcast %375 : vector<1x32xf32> to vector<2x32xf32>
    %377 = arith.addf %374, %376 : vector<2x32xf32>
    %c0_104 = arith.constant 0 : index
    %c0_105 = arith.constant 0 : index
    %378 = vector.load %arg14[%c0_104, %c0_105] : memref<2x32xf32, #tpu.memory_space<vmem>>, vector<2x32xf32>
    tpu.vector_store %arg14[%c0_104, %c0_105], %377 {strides = array<i32>} : memref<2x32xf32, #tpu.memory_space<vmem>>, vector<2x32xf32>,
    return
  }
}

</mosaic_0001>

<bundles_post_ra>
// kernel: tpu_custom_call.1
= control target key start
LH: loop header
LB: loop body
LE: loop exit
PB: predicated region body
PF: predicated region fallthrough
CT: control target
= control target key end

     0   :  { %s4945_s0 = inlined_call_operand.vmem [shape: s32[16,1], index: 0, kind: input, shape index: {}]   ;;  %s4946_s1 = inlined_call_operand.vmem [shape: f32[32,16], index: 1, kind: input, shape index: {}]   ;;  %s4947_s2 = inlined_call_operand.vmem [shape: f32[2,2,32], index: 2, kind: input, shape index: {}]   ;;  %s4948_s3 = inlined_call_operand.hbm [shape: f32[2,2,32], index: 3, kind: input, shape index: {}]   ;;  %s4949_s4 = inlined_call_operand.hbm [shape: f32[16,128], index: 4, kind: input, shape index: {}]   ;;  %s4950_s5 = inlined_call_operand.vmem [shape: f32[32,128], index: 5, kind: input, shape index: {}]   ;;  %s4951_s6 = inlined_call_operand.vmem [shape: f32[32,128], index: 6, kind: input, shape index: {}]   ;;  %s4952_s7 = inlined_call_operand.vmem [shape: f32[32,128], index: 7, kind: input, shape index: {}]   ;;  %s4953_s8 = inlined_call_operand.vmem [shape: f32[1,128], index: 8, kind: input, shape index: {}]   ;;  %s4954_s9 = inlined_call_operand.vmem [shape: f32[1,128], index: 9, kind: input, shape index: {}]   ;;  %s4955_s10 = inlined_call_operand.vmem [shape: f32[32,64], index: 10, kind: input, shape index: {}]   ;;  %s4956_s11 = inlined_call_operand.vmem [shape: f32[1,64], index: 11, kind: input, shape index: {}]   ;;  %s4957_s12 = inlined_call_operand.vmem [shape: f32[64,32], index: 12, kind: input, shape index: {}]   ;;  %s4958_s13 = inlined_call_operand.vmem [shape: f32[1,32], index: 13, kind: input, shape index: {}]   ;;  %s4959_s14 = inlined_call_operand.hbm [shape: f32[2,32], index: 14, kind: output, shape index: {0}]   ;;  %s4960_s15 = inlined_call_operand.hbm [shape: f32[2,2,32], index: 15, kind: output, shape index: {1}]   ;;  %s4961_s16 = inlined_call_operand.hbm [shape: f32[2,2,32], index: 16, kind: output, shape index: {2}]  }
   0x1   :  { %4963 = sst [smem:[#allocation15_spill]] %s4945_s0 }
   0x2   :  { %22 = vsyncpa [#allocation3], 0 }
   0x3   :  { %23 = vsyncpa [#allocation6], 0 }
   0x4   :  { %24 = vsyncpa [#allocation4], 0 }
   0x5   :  { %25 = vsyncpa [#allocation9], 0  ;;  %s4104_s21 = smov [#allocation2]  }
   0x6   :  { %s37_s22 = sshll.u32 %s4104_s21, 4  ;;  %s38_s22 = int_to_ptr.vmem [resolvable:$true] %s37_s22 }
   0x7   :  { %s4004_s23 = scalar_lea.vmem %s38_s22, 64  ;;  %p4009_p1 = scmp.lt.s32.totalorder %s38_s22, %s38_s22 }
   0x8   :  { %p4005_p0 = scmp.ne.s32.totalorder %s38_s22, %s4004_s23  ;;  %p4010_p2 = scmp.lt.s32.totalorder %s4004_s23, %s4004_s23 }
   0xa   :  { %p4011_p3 = por %p4010_p2, %p4009_p1 }
   0xc   :  { %p4012_p4 = pnand %p4011_p3, %p4005_p0 }
   0xe   :  { %4015 = shalt.err (!%p4012_p4)
}
   0xf   :  { %s4105_s24 = smov 32   ;;  %s4106_s25 = smov 2  }
  0x10   :  { %43 = dma.hbm_to_vmem [thread:$0]  %s4948_s3, 64, %s38_s22, [#allocation3], %s4105_s24, %s4105_s24, %s4106_s25  }
  0x11   :  { %s4107_s28 = smov [#allocation5]  }
  0x12   :  { %s49_s29 = sshll.u32 %s4107_s28, 4  ;;  %s50_s29 = int_to_ptr.vmem [resolvable:$true] %s49_s29 }
  0x13   :  { %s4024_s30 = scalar_lea.vmem %s50_s29, 256  ;;  %p4029_p6 = scmp.lt.s32.totalorder %s50_s29, %s50_s29 }
  0x14   :  { %p4025_p5 = scmp.ne.s32.totalorder %s50_s29, %s4024_s30  ;;  %p4030_p7 = scmp.lt.s32.totalorder %s4024_s30, %s4024_s30 }
  0x16   :  { %p4031_p8 = por %p4030_p7, %p4029_p6 }
  0x18   :  { %p4032_p9 = pnand %p4031_p8, %p4025_p5 }
  0x1a   :  { %4035 = shalt.err (!%p4032_p9)
}
  0x1b   :  { %s4108_s0 = smov 128   ;;  %s4109_s17 = smov 8  }
  0x1c   :  { %55 = dma.hbm_to_vmem [thread:$0]  %s4949_s4, 256, %s50_s29, [#allocation6], %s4108_s0, %s4108_s0, %s4109_s17  }
  0x1d   :  { %4096 = dma.done.wait [#allocation3], 64  }
  0x1e   :  { %4097 = vsyncadd [#allocation3], 4294967232 }
  0x1f   :  { %4098 = dma.done.wait [#allocation6], 256  }
  0x20   :  { %4099 = vsyncadd [#allocation6], 4294967040  ;;  %v4110_v0 = vmov 0   ;;  %v4111_v1 = vmov 0.0   ;;  %s4964_s21 = sld [smem:[#allocation15_spill]]  ;;  %v97_v3 = vld [vmem:[%s4946_s1 + $0x18] sm:$0xff]  ;;  %v82_v8 = vlaneseq }
  0x21   :  { %3843 = vset.pattern.permute.xlu0 %v4110_v0  ;;  %3479 = vmatprep.subr.mxu1 %v4111_v1  ;;  %v96_v4 = vld [vmem:[%s4946_s1 + $0x10] sm:$0xff]  ;;  %v95_v6 = vld [vmem:[%s4946_s1 + $0x8] sm:$0xff]  ;;  %v94_v7 = vld [vmem:[%s4946_s1] sm:$0xff]  ;;  %vm98_vm0 = vcmask 261120   ;;  %vm182_vm3 = vcmask 130048   ;;  %vm4112_vm4 = vmmov 0  }
  0x22   :  { %3468 = vmatprep.subr.mxu0 %v97_v3  ;;  %v83_v9 = vand.u32 127, %v82_v8  ;;  %v4242_v18 = vld [vmem:[%s4951_s6 + $0x18] sm:$0xff]  ;;  %v4247_v19 = vld [vmem:[%s4951_s6 + $0x10] sm:$0xff]  ;;  %3487 = vmatprep.mubr.msk.f32.mxu1 %vm4112_vm4, %v4111_v1  ;;  %v4258_v21 = vld [vmem:[%s4951_s6 + $0x8] sm:$0xff]  ;;  %s4113_s29 = smov 64   ;;  %vm3003_vm11 = vcmask 254976  }
  0x23   :  { %3469 = vmatpush3.msra.mxu0 %v97_v3  ;;  %3480 = vmatpush3.msra.mxu1 %v4242_v18  ;;  %v4252_v20 = vld [vmem:[#allocation5 + $0x8] sm:$0xff]  ;;  %v4261_v22 = vld [vmem:[#allocation5] sm:$0xff]  ;;  %v243_v24 = vld [vmem:[%s4947_s2] sm:$0x3]  ;;  %s4114_s23 = smov 96   ;;  %vm3125_vm12 = vcmask 523264  }
  0x24   :  { %3470 = vmatprep.subr.mxu0 %v96_v4  ;;  %3481 = vmatprep.subr.mxu1 %v4111_v1  ;;  %v4269_v23 = vld [vmem:[%s4951_s6] sm:$0xff]  ;;  %v4306_v54 = vld [vmem:[%s4952_s7 + $0x18] sm:$0xff]  ;;  %v4311_v55 = vld [vmem:[%s4952_s7 + $0x10] sm:$0xff]  ;;  %s4115_s28 = smov [#allocation8]  }
  0x25   :  { %3471 = vmatpush3.msra.mxu0 %v96_v4  ;;  %3482 = vmatpush3.msra.mxu1 %v4247_v19  ;;  %v246_v25 = vld [vmem:[#allocation2] sm:$0x3]  ;;  %v4317_v56 = vld [vmem:[%s4950_s5 + $0x18] sm:$0xff]  ;;  %v4323_v57 = vld [vmem:[%s4952_s7 + $0x8] sm:$0xff]  ;;  %s3215_s30 = sshll.u32 %s4115_s28, 4  ;;  %s3216_s30 = int_to_ptr.vmem [resolvable:$true] %s3215_s30 }
  0x26   :  { %v80_v2 = vld [vmem:[%s4964_s21] sm:$0xff]  ;;  %v81_v5 = vld [vmem:[%s4964_s21 + $0x8] sm:$0xff]  ;;  %3472 = vmatprep.subr.mxu0 %v95_v6  ;;  %3483 = vmatprep.subr.mxu1 %v4111_v1  ;;  %v4329_v58 = vld [vmem:[%s4950_s5 + $0x10] sm:$0xff]  ;;  %s4036_s0 = scalar_lea.vmem %s3216_s30, 64  ;;  %p4041_p11 = scmp.lt.s32.totalorder %s3216_s30, %s3216_s30 }
  0x27   :  { %85 = vperm.xlu0 %3843, %v80_v2   ;;  %3473 = vmatpush3.msra.mxu0 %v95_v6  ;;  %v4295_v38 = vld [vmem:[%s4953_s8] ss:$0 sm:$0xff]  ;;  %v4336_v59 = vld [vmem:[%s4950_s5 + $0x8] sm:$0xff]  ;;  %v3251_v61 = vld [vmem:[%s4947_s2 + $0x2] sm:$0x3]  ;;  %p4037_p10 = scmp.ne.s32.totalorder %s3216_s30, %s4036_s0  ;;  %p4042_p12 = scmp.lt.s32.totalorder %s4036_s0, %s4036_s0 }
  0x28   :  { %3474 = vmatprep.subr.mxu0 %v94_v7  ;;  %3484 = vmatpush3.msra.mxu1 %v4258_v21  ;;  %v4342_v60 = vld [vmem:[%s4952_s7] sm:$0xff] }
  0x29   :  { %3475 = vmatpush3.msra.mxu0 %v94_v7  ;;  %3485 = vmatprep.subr.mxu1 %v4111_v1  ;;  %v4355_v62 = vld [vmem:[%s4950_s5] sm:$0xff]  ;;  %p4043_p13 = por %p4042_p12, %p4041_p11 }
  0x2a   :  { %3490 = vmatprep.subr.mxu0 %v4111_v1  ;;  %3486 = vmatpush3.msra.mxu1 %v4269_v23  ;;  %v4408_v7 = vld [vmem:[%s4954_s9] ss:$0 sm:$0xff] }
  0x2b   :  { %88 = vperm.xlu0 %3843, %v81_v5   ;;  %3488 = vmatmul.mubr.msk.f32.vlgmr.msra.gmra.mxu1 %vm98_vm0, %v243_v24  ;;  %p4044_p0 = pnand %p4043_p13, %p4037_p10 }
  0x2c   :  { %3497 = vmatprep.subr.mxu1 %v4111_v1  ;;  %3505 = vmatprep.mubr.msk.f32.mxu1 %vm4112_vm4, %v4111_v1 }
  0x2d   :  { %3498 = vmatpush3.msra.mxu1 %v4306_v54 }
  0x2e   :  { %3499 = vmatprep.subr.mxu1 %v4111_v1 }
  0x2f   :  { %404 = vrot.lane.b32.xlu0 %v246_v25, %s4105_s24  ;;  %3500 = vmatpush3.msra.mxu1 %v4311_v55 }
  0x30   :  { %3501 = vmatprep.subr.mxu1 %v4111_v1 }
  0x31   :  { %3502 = vmatpush3.msra.mxu1 %v4323_v57 }
  0x32   :  { %3503 = vmatprep.subr.mxu1 %v4111_v1 }
  0x33   :  { %3504 = vmatpush3.msra.mxu1 %v4342_v60 }
  0x34   :  { %3519 = vmatprep.subr.mxu1 %v4111_v1  ;;  %3506 = vmatmul.mubr.msk.f32.vlgmr.msra.gmra.mxu1 %vm98_vm0, %v3251_v61 }
  0x35   :  { %3520 = vmatpush3.msra.mxu1 %v4242_v18  ;;  %3527 = vmatprep.mubr.msk.f32.mxu1 %vm4112_vm4, %v4111_v1 }
  0x36   :  { %3521 = vmatprep.subr.mxu1 %v4111_v1 }
  0x37   :  { %3522 = vmatpush3.msra.mxu1 %v4247_v19 }
  0x38   :  { %3523 = vmatprep.subr.mxu1 %v4111_v1 }
  0x39   :  { %3524 = vmatpush3.msra.mxu1 %v4258_v21 }
  0x3a   :  { %3525 = vmatprep.subr.mxu1 %v4111_v1 }
  0x3b   :  { %3526 = vmatpush3.msra.mxu1 %v4269_v23 }
  0x3c   :  { %3548 = vmatprep.subr.mxu1 %v4111_v1 }
  0xa2   :  { %v86_v10 = vpop.permute.xlu0 %85 }
  0xa3   :  { %vm90_vm1 = vcmp.eq.s32.totalorder %v86_v10, %v83_v9 }
  0xa4   :  { %v92_v11 = vsel %vm90_vm1, 1.0, %v4111_v1 }
  0xa5   :  { %3476 = vmatprep.mubr.msk.f32.mxu0 %vm98_vm0, %v92_v11 }
  0xa6   :  { %v89_v12 = vpop.permute.xlu0 %88 }
  0xa7   :  { %vm91_vm2 = vcmp.eq.s32.totalorder %v89_v12, %v83_v9 }
  0xa8   :  { %v93_v13 = vsel %vm91_vm2, 1.0, %v4111_v1 }
  0xa9   :  { %3477 = vmatmul.mubr.msk.f32.vlgmr.msra.gmra.mxu0 %vm98_vm0, %v93_v13 }
  0xaa   :  { %3491 = vmatpush3.msra.mxu0 %v4252_v20  ;;  %3494 = vmatprep.mubr.msk.f32.mxu0 %vm4112_vm4, %v4111_v1  ;;  %v405_v50 = vpop.permute.xlu0 %404 }
  0xab   :  { %3492 = vmatprep.subr.mxu0 %v4111_v1 }
  0xac   :  { %3493 = vmatpush3.msra.mxu0 %v4261_v22 }
  0xad   :  { %3508 = vmatprep.subr.mxu0 %v4111_v1 }
  0xeb   :  { %v318_v36 = vpop.f32.mrf.mxu1 }
  0xed   :  { %v3489_v37 = vpop.f32.mrf.mxu1 }
  0xf4   :  { %v493_v3 = vpop.f32.mrf.mxu1 }
  0xf6   :  { %v3507_v4 = vpop.f32.mrf.mxu1 }
 0x169   :  { %v4236_v14 = vpop.f32.mrf.mxu0 }
 0x16b   :  { %v171_v15 = vpop.f32.mrf.mxu0 }
 0x16c   :  { %v180_v16 = vmul.f32 %v171_v15, %v171_v15 }
 0x16e   :  { %v183_v17 = vsel %vm182_vm3, %v180_v16, 0.0 }
 0x16f   :  { %184 = vadd.xlane.f32.xlu1 %v183_v17 }
 0x1f8   :  { %v185_v26 = vpop.xlane.xlu1 %184 }
 0x1f9   :  { %3844 = vrsqrt.f32 %v185_v26  ;;  %vm191_vm5 = vcmp.eq.f32.partialorder %v185_v26, inf  ;;  %v194_v29 = vand.u32 2147483648, %v185_v26  ;;  %vm193_vm6 = vcmp.eq.f32.partialorder %v185_v26, 0.0 }
 0x206   :  { %v3845_v27 = vpop.eup %3844 }
 0x207   :  { %v190_v28 = vmul.f32 %v3845_v27, %v185_v26 }
 0x209   :  { %v192_v30 = vsel %vm191_vm5, %v185_v26, %v190_v28  ;;  %v248_v26 = vld [vmem:[#allocation2 + $0x2] sm:$0x3] }
 0x20a   :  { %v195_v31 = vsel %vm193_vm6, %v194_v29, %v192_v30 }
 0x20b   :  { %v205_v32 = vadd.f32 1e-07, %v195_v31  ;;  %vm203_vm7 = vcmp.gt.f32.partialorder %v195_v31, 1.0 }
 0x20d   :  { %3846 = vrcp.f32 %v205_v32 }
 0x21a   :  { %v3847_v33 = vpop.eup %3846 }
 0x21b   :  { %v211_v34 = vsel %vm203_vm7, %v3847_v33, 1.0 }
 0x21c   :  { %v4286_v35 = vmul.f32 %v211_v34, %v171_v15 }
 0x21e   :  { %3495 = vmatmul.mubr.msk.f32.vlgmr.msra.gmra.mxu0 %vm182_vm3, %v4286_v35  ;;  %v671_v6 = vrot.slane %v4286_v35, 2 }
 0x21f   :  { %3516 = vmatprep.mubr.msk.f32.mxu0 %vm4112_vm4, %v4111_v1  ;;  %3509 = vmatpush3.msra.mxu0 %v4317_v56 }
 0x220   :  { %3510 = vmatprep.subr.mxu0 %v4111_v1 }
 0x221   :  { %3511 = vmatpush3.msra.mxu0 %v4329_v58 }
 0x222   :  { %3512 = vmatprep.subr.mxu0 %v4111_v1 }
 0x223   :  { %3513 = vmatpush3.msra.mxu0 %v4336_v59 }
 0x224   :  { %3514 = vmatprep.subr.mxu0 %v4111_v1 }
 0x225   :  { %3515 = vmatpush3.msra.mxu0 %v4355_v62 }
 0x226   :  { %3530 = vmatprep.subr.mxu0 %v4111_v1 }
 0x2de   :  { %v391_v39 = vpop.f32.mrf.mxu0 }
 0x2df   :  { %v392_v40 = vadd.f32 %v391_v39, %v318_v36 }
 0x2e0   :  { %v3496_v41 = vpop.f32.mrf.mxu0 }
 0x2e1   :  { %v395_v42 = vadd.f32 %v4295_v38, %v392_v40 }
 0x2e3   :  { %3848 = vtanh.f32 %v395_v42  ;;  %v3254_v44 = vmul.f32 -1.442695, %v395_v42 }
 0x2e5   :  { %3850 = vpow2.f32 %v3254_v44 }
 0x2f0   :  { %v3849_v43 = vpop.eup %3848 }
 0x2f1   :  { %409 = vrot.lane.b32.xlu1 %v3849_v43, %s4113_s29 }
 0x2f2   :  { %v3851_v45 = vpop.eup %3850 }
 0x2f3   :  { %v399_v46 = vadd.f32 1.0, %v3851_v45 }
 0x2f5   :  { %3852 = vrcp.f32 %v399_v46 }
 0x302   :  { %v3853_v47 = vpop.eup %3852 }
 0x303   :  { %v407_v51 = vmul.f32 %v3853_v47, %v405_v50 }
 0x363   :  { %v410_v48 = vpop.permute.xlu1 %409 }
 0x364   :  { %v412_v49 = vmul.f32 %v3853_v47, %v410_v48 }
 0x366   :  { %414 = vrot.lane.b32.xlu0 %v412_v49, %s4105_s24 }
 0x3d8   :  { %v415_v52 = vpop.permute.xlu0 %414 }
 0x3d9   :  { %v4300_v53 = vadd.f32 %v415_v52, %v407_v51 }
 0x3db   :  { %3854 = vtanh.f32 %v4300_v53 }
 0x3e8   :  { %v3855_v63 = vpop.eup %3854 }
 0x3e9   :  { %420 = vrot.lane.b32.xlu0 %v3855_v63, %s4113_s29 }
 0x45b   :  { %v421_v0 = vpop.permute.xlu0 %420 }
 0x45c   :  { %v423_v2 = vmul.f32 %v3853_v47, %v421_v0 }
 0x45e   :  { %498 = vrot.lane.b32.xlu0 %v423_v2, %s4105_s24  ;;  %v1014_v2 = vrot.slane %v4286_v35, 4 }
 0x4d0   :  { %v499_v5 = vpop.permute.xlu0 %498 }
 0x4d1   :  { %3517 = vmatmul.mubr.msk.f32.vlgmr.msra.gmra.mxu0 %vm98_vm0, %v499_v5  ;;  %3528 = vmatmul.mubr.msk.f32.vlgmr.msra.gmra.mxu1 %vm98_vm0, %v499_v5 }
 0x4d2   :  { %3531 = vmatpush3.msra.mxu0 %v4252_v20  ;;  %3534 = vmatprep.mubr.msk.f32.mxu0 %vm4112_vm4, %v4111_v1 }
 0x4d3   :  { %3532 = vmatprep.subr.mxu0 %v4111_v1  ;;  %3549 = vmatpush3.msra.mxu1 %v4317_v56 }
 0x4d4   :  { %3533 = vmatpush3.msra.mxu0 %v4261_v22  ;;  %3550 = vmatprep.subr.mxu1 %v4111_v1 }
 0x4d5   :  { %3535 = vmatmul.mubr.msk.f32.vlgmr.msra.gmra.mxu0 %vm182_vm3, %v671_v6  ;;  %3537 = vmatprep.subr.mxu0 %v4111_v1 }
 0x4d6   :  { %3538 = vmatpush3.msra.mxu0 %v4306_v54  ;;  %3545 = vmatprep.mubr.msk.f32.mxu0 %vm4112_vm4, %v4111_v1 }
 0x4d7   :  { %3539 = vmatprep.subr.mxu0 %v4111_v1  ;;  %3551 = vmatpush3.msra.mxu1 %v4329_v58 }
 0x4d8   :  { %3540 = vmatpush3.msra.mxu0 %v4311_v55  ;;  %3552 = vmatprep.subr.mxu1 %v4111_v1 }
 0x4d9   :  { %3541 = vmatprep.subr.mxu0 %v4111_v1  ;;  %3553 = vmatpush3.msra.mxu1 %v4336_v59 }
 0x4da   :  { %3542 = vmatpush3.msra.mxu0 %v4323_v57  ;;  %3554 = vmatprep.subr.mxu1 %v4111_v1 }
 0x4db   :  { %3543 = vmatprep.subr.mxu0 %v4111_v1  ;;  %3555 = vmatpush3.msra.mxu1 %v4355_v62 }
 0x4dc   :  { %3544 = vmatpush3.msra.mxu0 %v4342_v60  ;;  %3556 = vmatprep.mubr.msk.f32.mxu1 %vm4112_vm4, %v4111_v1 }
 0x4dd   :  { %3559 = vmatprep.subr.mxu0 %v4111_v1  ;;  %3577 = vmatprep.subr.mxu1 %v4111_v1 }
 0x591   :  { %v568_v8 = vpop.f32.mrf.mxu0  ;;  %v667_v9 = vpop.f32.mrf.mxu1 }
 0x592   :  { %v569_v10 = vadd.f32 %v568_v8, %v493_v3 }
 0x593   :  { %v3518_v11 = vpop.f32.mrf.mxu0  ;;  %v3529_v12 = vpop.f32.mrf.mxu1 }
 0x594   :  { %v572_v13 = vadd.f32 %v4408_v7, %v569_v10 }
 0x595   :  { %v740_v15 = vpop.f32.mrf.mxu0 }
 0x596   :  { %3856 = vtanh.f32 %v572_v13  ;;  %v741_v16 = vadd.f32 %v740_v15, %v667_v9  ;;  %v3257_v28 = vmul.f32 -1.442695, %v572_v13 }
 0x597   :  { %v3536_v17 = vpop.f32.mrf.mxu0 }
 0x598   :  { %v744_v24 = vadd.f32 %v4295_v38, %v741_v16 }
 0x59a   :  { %3858 = vtanh.f32 %v744_v24  ;;  %v3260_v29 = vmul.f32 -1.442695, %v744_v24 }
 0x59b   :  { %3860 = vpow2.f32 %v3257_v28 }
 0x59c   :  { %3862 = vpow2.f32 %v3260_v29 }
 0x5a3   :  { %v3857_v25 = vpop.eup %3856 }
 0x5a4   :  { %586 = vrot.lane.b32.xlu1 %v3857_v25, %s4113_s29 }
 0x5a7   :  { %v3859_v27 = vpop.eup %3858 }
 0x5a8   :  { %581 = vrot.lane.b32.xlu1 %v248_v26, %s4105_s24  ;;  %754 = vrot.lane.b32.xlu0 %v3859_v27, %s4113_s29  ;;  %v3861_v30 = vpop.eup %3860 }
 0x5a9   :  { %v576_v31 = vadd.f32 1.0, %v3861_v30  ;;  %v3863_v32 = vpop.eup %3862 }
 0x5aa   :  { %v748_v33 = vadd.f32 1.0, %v3863_v32 }
 0x5ab   :  { %3864 = vrcp.f32 %v576_v31 }
 0x5ac   :  { %3866 = vrcp.f32 %v748_v33 }
 0x5b8   :  { %v3865_v34 = vpop.eup %3864 }
 0x5b9   :  { %v3867_v39 = vpop.eup %3866 }
 0x5ba   :  { %v752_v46 = vmul.f32 %v3867_v39, %v4300_v53 }
 0x616   :  { %v587_v36 = vpop.permute.xlu1 %586 }
 0x617   :  { %v589_v37 = vmul.f32 %v3865_v34, %v587_v36 }
 0x619   :  { %591 = vrot.lane.b32.xlu0 %v589_v37, %s4105_s24 }
 0x61a   :  { %v755_v40 = vpop.permute.xlu0 %754  ;;  %v582_v42 = vpop.permute.xlu1 %581 }
 0x61b   :  { %v757_v41 = vmul.f32 %v3867_v39, %v755_v40  ;;  %v584_v43 = vmul.f32 %v3865_v34, %v582_v42 }
 0x61d   :  { %759 = vrot.lane.b32.xlu1 %v757_v41, %s4105_s24 }
 0x68b   :  { %v592_v44 = vpop.permute.xlu0 %591 }
 0x68c   :  { %v4417_v45 = vadd.f32 %v592_v44, %v584_v43 }
 0x68e   :  { %3868 = vtanh.f32 %v4417_v45 }
 0x68f   :  { %v760_v47 = vpop.permute.xlu1 %759 }
 0x690   :  { %v4421_v48 = vadd.f32 %v760_v47, %v752_v46 }
 0x692   :  { %3870 = vtanh.f32 %v4421_v48 }
 0x69b   :  { %v3869_v49 = vpop.eup %3868 }
 0x69c   :  { %597 = vrot.lane.b32.xlu0 %v3869_v49, %s4113_s29 }
 0x69f   :  { %v3871_v50 = vpop.eup %3870 }
 0x6a0   :  { %765 = vrot.lane.b32.xlu1 %v3871_v50, %s4113_s29 }
 0x70e   :  { %v598_v51 = vpop.permute.xlu0 %597 }
 0x70f   :  { %v600_v52 = vmul.f32 %v3865_v34, %v598_v51 }
 0x711   :  { %770 = vrot.lane.b32.xlu0 %v600_v52, %s4105_s24 }
 0x712   :  { %v766_v61 = vpop.permute.xlu1 %765 }
 0x713   :  { %v768_v63 = vmul.f32 %v3867_v39, %v766_v61  ;;  %v1357_v61 = vrot.slane %v4286_v35, 6 }
 0x715   :  { %845 = vrot.lane.b32.xlu1 %v768_v63, %s4105_s24 }
 0x783   :  { %v771_v53 = vpop.permute.xlu0 %770 }
 0x784   :  { %3546 = vmatmul.mubr.msk.f32.vlgmr.msra.gmra.mxu0 %vm98_vm0, %v771_v53 }
 0x785   :  { %3560 = vmatpush3.msra.mxu0 %v4242_v18  ;;  %3567 = vmatprep.mubr.msk.f32.mxu0 %vm4112_vm4, %v4111_v1 }
 0x786   :  { %3561 = vmatprep.subr.mxu0 %v4111_v1 }
 0x787   :  { %3562 = vmatpush3.msra.mxu0 %v4247_v19  ;;  %v846_v0 = vpop.permute.xlu1 %845 }
 0x788   :  { %3563 = vmatprep.subr.mxu0 %v4111_v1  ;;  %3557 = vmatmul.mubr.msk.f32.vlgmr.msra.gmra.mxu1 %vm98_vm0, %v846_v0 }
 0x789   :  { %3564 = vmatpush3.msra.mxu0 %v4258_v21  ;;  %3578 = vmatpush3.msra.mxu1 %v4306_v54 }
 0x78a   :  { %3565 = vmatprep.subr.mxu0 %v4111_v1  ;;  %3579 = vmatprep.subr.mxu1 %v4111_v1 }
 0x78b   :  { %3566 = vmatpush3.msra.mxu0 %v4269_v23  ;;  %3580 = vmatpush3.msra.mxu1 %v4311_v55 }
 0x78c   :  { %3568 = vmatmul.mubr.msk.f32.vlgmr.msra.gmra.mxu0 %vm98_vm0, %v846_v0  ;;  %3570 = vmatprep.subr.mxu0 %v4111_v1 }
 0x78d   :  { %3571 = vmatpush3.msra.mxu0 %v4252_v20  ;;  %3574 = vmatprep.mubr.msk.f32.mxu0 %vm4112_vm4, %v4111_v1 }
 0x78e   :  { %3572 = vmatprep.subr.mxu0 %v4111_v1  ;;  %3581 = vmatprep.subr.mxu1 %v4111_v1 }
 0x78f   :  { %3573 = vmatpush3.msra.mxu0 %v4261_v22  ;;  %3582 = vmatpush3.msra.mxu1 %v4323_v57 }
 0x790   :  { %3575 = vmatmul.mubr.msk.f32.vlgmr.msra.gmra.mxu0 %vm182_vm3, %v1014_v2  ;;  %3583 = vmatprep.subr.mxu1 %v4111_v1 }
 0x791   :  { %3584 = vmatpush3.msra.mxu1 %v4342_v60  ;;  %3585 = vmatprep.mubr.msk.f32.mxu1 %vm4112_vm4, %v4111_v1 }
 0x792   :  { %3588 = vmatprep.subr.mxu0 %v4111_v1  ;;  %3599 = vmatprep.subr.mxu1 %v4111_v1 }
 0x793   :  { %3589 = vmatpush3.msra.mxu0 %v4317_v56  ;;  %3596 = vmatprep.mubr.msk.f32.mxu0 %vm4112_vm4, %v4111_v1 }
 0x794   :  { %3590 = vmatprep.subr.mxu0 %v4111_v1 }
 0x795   :  { %3591 = vmatpush3.msra.mxu0 %v4329_v58 }
 0x796   :  { %3592 = vmatprep.subr.mxu0 %v4111_v1 }
 0x797   :  { %3593 = vmatpush3.msra.mxu0 %v4336_v59 }
 0x798   :  { %3594 = vmatprep.subr.mxu0 %v4111_v1 }
 0x799   :  { %3595 = vmatpush3.msra.mxu0 %v4355_v62 }
 0x79a   :  { %3610 = vmatprep.subr.mxu0 %v4111_v1 }
 0x844   :  { %v840_v3 = vpop.f32.mrf.mxu0 }
 0x846   :  { %v3547_v4 = vpop.f32.mrf.mxu0 }
 0x848   :  { %v915_v5 = vpop.f32.mrf.mxu1 }
 0x849   :  { %v916_v6 = vadd.f32 %v915_v5, %v840_v3 }
 0x84a   :  { %v3558_v8 = vpop.f32.mrf.mxu1 }
 0x84b   :  { %v919_v9 = vadd.f32 %v4408_v7, %v916_v6 }
 0x84c   :  { %v1010_v10 = vpop.f32.mrf.mxu0 }
 0x84d   :  { %3872 = vtanh.f32 %v919_v9  ;;  %v3263_v25 = vmul.f32 -1.442695, %v919_v9 }
 0x84e   :  { %v3569_v11 = vpop.f32.mrf.mxu0 }
 0x850   :  { %v1083_v12 = vpop.f32.mrf.mxu0 }
 0x851   :  { %v1084_v13 = vadd.f32 %v1083_v12, %v1010_v10 }
 0x852   :  { %v3576_v15 = vpop.f32.mrf.mxu0 }
 0x853   :  { %v1087_v16 = vadd.f32 %v4295_v38, %v1084_v13 }
 0x855   :  { %3874 = vtanh.f32 %v1087_v16  ;;  %v3266_v26 = vmul.f32 -1.442695, %v1087_v16 }
 0x856   :  { %3876 = vpow2.f32 %v3263_v25 }
 0x857   :  { %3878 = vpow2.f32 %v3266_v26 }
 0x85a   :  { %v3873_v17 = vpop.eup %3872 }
 0x85b   :  { %929 = vrot.lane.b32.xlu0 %v3873_v17, %s4113_s29 }
 0x862   :  { %v3875_v24 = vpop.eup %3874 }
 0x863   :  { %1097 = vrot.lane.b32.xlu1 %v3875_v24, %s4113_s29  ;;  %v3877_v27 = vpop.eup %3876 }
 0x864   :  { %v923_v28 = vadd.f32 1.0, %v3877_v27  ;;  %v3879_v29 = vpop.eup %3878 }
 0x865   :  { %v1091_v30 = vadd.f32 1.0, %v3879_v29 }
 0x866   :  { %3880 = vrcp.f32 %v923_v28 }
 0x867   :  { %3882 = vrcp.f32 %v1091_v30 }
 0x873   :  { %v3881_v31 = vpop.eup %3880 }
 0x874   :  { %v3883_v34 = vpop.eup %3882  ;;  %v927_v39 = vmul.f32 %v3881_v31, %v4417_v45 }
 0x875   :  { %v1095_v42 = vmul.f32 %v3883_v34, %v4421_v48 }
 0x8cd   :  { %v930_v32 = vpop.permute.xlu0 %929 }
 0x8ce   :  { %v932_v33 = vmul.f32 %v3881_v31, %v930_v32 }
 0x8d0   :  { %934 = vrot.lane.b32.xlu0 %v932_v33, %s4105_s24 }
 0x8d5   :  { %v1098_v36 = vpop.permute.xlu1 %1097 }
 0x8d6   :  { %v1100_v37 = vmul.f32 %v3883_v34, %v1098_v36 }
 0x8d8   :  { %1102 = vrot.lane.b32.xlu1 %v1100_v37, %s4105_s24 }
 0x942   :  { %v935_v40 = vpop.permute.xlu0 %934 }
 0x943   :  { %v4476_v41 = vadd.f32 %v935_v40, %v927_v39 }
 0x945   :  { %3884 = vtanh.f32 %v4476_v41 }
 0x94a   :  { %v1103_v43 = vpop.permute.xlu1 %1102 }
 0x94b   :  { %v4480_v44 = vadd.f32 %v1103_v43, %v1095_v42 }
 0x94d   :  { %3886 = vtanh.f32 %v4480_v44 }
 0x952   :  { %v3885_v46 = vpop.eup %3884 }
 0x953   :  { %940 = vrot.lane.b32.xlu0 %v3885_v46, %s4113_s29 }
 0x95a   :  { %v3887_v47 = vpop.eup %3886 }
 0x95b   :  { %1108 = vrot.lane.b32.xlu1 %v3887_v47, %s4113_s29 }
 0x9c5   :  { %v941_v49 = vpop.permute.xlu0 %940 }
 0x9c6   :  { %v943_v45 = vmul.f32 %v3881_v31, %v941_v49 }
 0x9c8   :  { %1113 = vrot.lane.b32.xlu0 %v943_v45, %s4105_s24 }
 0x9cd   :  { %v1109_v50 = vpop.permute.xlu1 %1108 }
 0x9ce   :  { %v1111_v51 = vmul.f32 %v3883_v34, %v1109_v50 }
 0x9d0   :  { %1188 = vrot.lane.b32.xlu1 %v1111_v51, %s4105_s24 }
 0xa3a   :  { %v1114_v48 = vpop.permute.xlu0 %1113 }
 0xa3b   :  { %3586 = vmatmul.mubr.msk.f32.vlgmr.msra.gmra.mxu1 %vm98_vm0, %v1114_v48 }
 0xa3c   :  { %3600 = vmatpush3.msra.mxu1 %v4242_v18  ;;  %3607 = vmatprep.mubr.msk.f32.mxu1 %vm4112_vm4, %v4111_v1 }
 0xa3d   :  { %3601 = vmatprep.subr.mxu1 %v4111_v1 }
 0xa3e   :  { %3602 = vmatpush3.msra.mxu1 %v4247_v19 }
 0xa3f   :  { %3603 = vmatprep.subr.mxu1 %v4111_v1 }
 0xa40   :  { %3604 = vmatpush3.msra.mxu1 %v4258_v21 }
 0xa41   :  { %3605 = vmatprep.subr.mxu1 %v4111_v1 }
 0xa42   :  { %3606 = vmatpush3.msra.mxu1 %v4269_v23  ;;  %v1189_v52 = vpop.permute.xlu1 %1188 }
 0xa43   :  { %3597 = vmatmul.mubr.msk.f32.vlgmr.msra.gmra.mxu0 %vm98_vm0, %v1189_v52  ;;  %3608 = vmatmul.mubr.msk.f32.vlgmr.msra.gmra.mxu1 %vm98_vm0, %v1189_v52 }
 0xa44   :  { %3611 = vmatpush3.msra.mxu0 %v4252_v20  ;;  %3614 = vmatprep.mubr.msk.f32.mxu0 %vm4112_vm4, %v4111_v1 }
 0xa45   :  { %3612 = vmatprep.subr.mxu0 %v4111_v1  ;;  %3628 = vmatprep.subr.mxu1 %v4111_v1 }
 0xa46   :  { %3613 = vmatpush3.msra.mxu0 %v4261_v22  ;;  %3629 = vmatpush3.msra.mxu1 %v4317_v56 }
 0xa47   :  { %3615 = vmatmul.mubr.msk.f32.vlgmr.msra.gmra.mxu0 %vm182_vm3, %v1357_v61  ;;  %3617 = vmatprep.subr.mxu0 %v4111_v1 }
 0xa48   :  { %3618 = vmatpush3.msra.mxu0 %v4306_v54  ;;  %3630 = vmatprep.subr.mxu1 %v4111_v1 }
 0xa49   :  { %3619 = vmatprep.subr.mxu0 %v4111_v1  ;;  %3625 = vmatprep.mubr.msk.f32.mxu0 %vm4112_vm4, %v4111_v1 }
 0xa4a   :  { %3620 = vmatpush3.msra.mxu0 %v4311_v55  ;;  %3631 = vmatpush3.msra.mxu1 %v4329_v58 }
 0xa4b   :  { %3621 = vmatprep.subr.mxu0 %v4111_v1  ;;  %3632 = vmatprep.subr.mxu1 %v4111_v1 }
 0xa4c   :  { %3622 = vmatpush3.msra.mxu0 %v4323_v57  ;;  %3633 = vmatpush3.msra.mxu1 %v4336_v59 }
 0xa4d   :  { %3623 = vmatprep.subr.mxu0 %v4111_v1  ;;  %3634 = vmatprep.subr.mxu1 %v4111_v1 }
 0xa4e   :  { %3624 = vmatpush3.msra.mxu0 %v4342_v60  ;;  %3635 = vmatpush3.msra.mxu1 %v4355_v62 }
 0xa4f   :  { %3639 = vmatprep.subr.mxu0 %v4111_v1  ;;  %3636 = vmatprep.mubr.msk.f32.mxu1 %vm4112_vm4, %v4111_v1 }
 0xa50   :  { %3650 = vmatprep.subr.mxu1 %v4111_v1 }
 0xafb   :  { %v1183_v35 = vpop.f32.mrf.mxu1 }
 0xafd   :  { %v3587_v63 = vpop.f32.mrf.mxu1 }
 0xb03   :  { %v1258_v53 = vpop.f32.mrf.mxu0  ;;  %v1353_v0 = vpop.f32.mrf.mxu1 }
 0xb04   :  { %v1259_v2 = vadd.f32 %v1258_v53, %v1183_v35 }
 0xb05   :  { %v3598_v3 = vpop.f32.mrf.mxu0  ;;  %v3609_v4 = vpop.f32.mrf.mxu1 }
 0xb06   :  { %v1262_v5 = vadd.f32 %v4408_v7, %v1259_v2 }
 0xb07   :  { %v1426_v6 = vpop.f32.mrf.mxu0 }
 0xb08   :  { %3888 = vtanh.f32 %v1262_v5  ;;  %v1427_v8 = vadd.f32 %v1426_v6, %v1353_v0  ;;  %v3269_v13 = vmul.f32 -1.442695, %v1262_v5 }
 0xb09   :  { %v3616_v9 = vpop.f32.mrf.mxu0 }
 0xb0a   :  { %v1430_v10 = vadd.f32 %v4295_v38, %v1427_v8 }
 0xb0c   :  { %3890 = vtanh.f32 %v1430_v10  ;;  %v3272_v15 = vmul.f32 -1.442695, %v1430_v10 }
 0xb0d   :  { %3892 = vpow2.f32 %v3269_v13 }
 0xb0e   :  { %3894 = vpow2.f32 %v3272_v15 }
 0xb15   :  { %v3889_v11 = vpop.eup %3888 }
 0xb16   :  { %1272 = vrot.lane.b32.xlu0 %v3889_v11, %s4113_s29 }
 0xb19   :  { %v3891_v12 = vpop.eup %3890 }
 0xb1a   :  { %1440 = vrot.lane.b32.xlu1 %v3891_v12, %s4113_s29  ;;  %v3893_v16 = vpop.eup %3892 }
 0xb1b   :  { %v1266_v17 = vadd.f32 1.0, %v3893_v16  ;;  %v3895_v24 = vpop.eup %3894 }
 0xb1c   :  { %v1434_v25 = vadd.f32 1.0, %v3895_v24 }
 0xb1d   :  { %3896 = vrcp.f32 %v1266_v17 }
 0xb1e   :  { %3898 = vrcp.f32 %v1434_v25 }
 0xb2a   :  { %v3897_v26 = vpop.eup %3896 }
 0xb2b   :  { %v3899_v29 = vpop.eup %3898  ;;  %v1270_v32 = vmul.f32 %v3897_v26, %v4476_v41  ;;  %v181_v41 = vmul.f32 %v4236_v14, %v4236_v14 }
 0xb2c   :  { %v1438_v36 = vmul.f32 %v3899_v29, %v4480_v44 }
 0xb2d   :  { %v186_v43 = vsel %vm182_vm3, %v181_v41, 0.0 }
 0xb88   :  { %v1273_v27 = vpop.permute.xlu0 %1272 }
 0xb89   :  { %v1275_v28 = vmul.f32 %v3897_v26, %v1273_v27 }
 0xb8b   :  { %1277 = vrot.lane.b32.xlu0 %v1275_v28, %s4105_s24 }
 0xb8c   :  { %v1441_v30 = vpop.permute.xlu1 %1440 }
 0xb8d   :  { %v1443_v31 = vmul.f32 %v3899_v29, %v1441_v30 }
 0xb8f   :  { %1445 = vrot.lane.b32.xlu1 %v1443_v31, %s4105_s24 }
 0xbfd   :  { %v1278_v33 = vpop.permute.xlu0 %1277 }
 0xbfe   :  { %v4535_v34 = vadd.f32 %v1278_v33, %v1270_v32 }
 0xc00   :  { %3900 = vtanh.f32 %v4535_v34 }
 0xc01   :  { %v1446_v37 = vpop.permute.xlu1 %1445 }
 0xc02   :  { %v4539_v39 = vadd.f32 %v1446_v37, %v1438_v36 }
 0xc04   :  { %3902 = vtanh.f32 %v4539_v39 }
 0xc0d   :  { %v3901_v40 = vpop.eup %3900 }
 0xc0e   :  { %1283 = vrot.lane.b32.xlu0 %v3901_v40, %s4113_s29 }
 0xc11   :  { %v3903_v42 = vpop.eup %3902 }
 0xc12   :  { %1451 = vrot.lane.b32.xlu1 %v3903_v42, %s4113_s29 }
 0xc2d   :  { %187 = vadd.xlane.f32.xlu0 %v186_v43 }
 0xc80   :  { %v1284_v46 = vpop.permute.xlu0 %1283 }
 0xc81   :  { %v1286_v47 = vmul.f32 %v3897_v26, %v1284_v46 }
 0xc83   :  { %1456 = vrot.lane.b32.xlu1 %v1286_v47, %s4105_s24 }
 0xc84   :  { %v1452_v44 = vpop.permute.xlu1 %1451 }
 0xc85   :  { %v1454_v49 = vmul.f32 %v3899_v29, %v1452_v44 }
 0xc87   :  { %1531 = vrot.lane.b32.xlu1 %v1454_v49, %s4105_s24 }
 0xcb6   :  { %v188_v45 = vpop.xlane.xlu0 %187 }
 0xcb7   :  { %3904 = vrsqrt.f32 %v188_v45  ;;  %vm198_vm8 = vcmp.eq.f32.partialorder %v188_v45, inf  ;;  %v201_v52 = vand.u32 2147483648, %v188_v45  ;;  %vm200_vm9 = vcmp.eq.f32.partialorder %v188_v45, 0.0 }
 0xcc4   :  { %v3905_v50 = vpop.eup %3904 }
 0xcc5   :  { %v197_v51 = vmul.f32 %v3905_v50, %v188_v45 }
 0xcc7   :  { %v199_v48 = vsel %vm198_vm8, %v188_v45, %v197_v51 }
 0xcc8   :  { %v202_v61 = vsel %vm200_vm9, %v201_v52, %v199_v48 }
 0xcc9   :  { %v206_v35 = vadd.f32 1e-07, %v202_v61  ;;  %vm204_vm10 = vcmp.gt.f32.partialorder %v202_v61, 1.0 }
 0xccb   :  { %3906 = vrcp.f32 %v206_v35 }
 0xcd8   :  { %v3907_v53 = vpop.eup %3906 }
 0xcd9   :  { %v212_v2 = vsel %vm204_vm10, %v3907_v53, 1.0 }
 0xcda   :  { %v4564_v3 = vmul.f32 %v4236_v14, %v212_v2 }
 0xcf5   :  { %v1457_v63 = vpop.permute.xlu1 %1456 }
 0xcf6   :  { %3626 = vmatmul.mubr.msk.f32.vlgmr.msra.gmra.mxu0 %vm98_vm0, %v1457_v63 }
 0xcf7   :  { %3640 = vmatpush3.msra.mxu0 %v4242_v18  ;;  %3647 = vmatprep.mubr.msk.f32.mxu0 %vm4112_vm4, %v4111_v1 }
 0xcf8   :  { %3641 = vmatprep.subr.mxu0 %v4111_v1 }
 0xcf9   :  { %3642 = vmatpush3.msra.mxu0 %v4247_v19  ;;  %v1532_v0 = vpop.permute.xlu1 %1531 }
 0xcfa   :  { %3643 = vmatprep.subr.mxu0 %v4111_v1  ;;  %3637 = vmatmul.mubr.msk.f32.vlgmr.msra.gmra.mxu1 %vm98_vm0, %v1532_v0 }
 0xcfb   :  { %3644 = vmatpush3.msra.mxu0 %v4258_v21  ;;  %3651 = vmatpush3.msra.mxu1 %v4252_v20 }
 0xcfc   :  { %3645 = vmatprep.subr.mxu0 %v4111_v1  ;;  %3652 = vmatprep.subr.mxu1 %v4111_v1 }
 0xcfd   :  { %3646 = vmatpush3.msra.mxu0 %v4269_v23  ;;  %3653 = vmatpush3.msra.mxu1 %v4261_v22 }
 0xcfe   :  { %3648 = vmatmul.mubr.msk.f32.vlgmr.msra.gmra.mxu0 %vm98_vm0, %v1532_v0  ;;  %3654 = vmatprep.mubr.msk.f32.mxu1 %vm4112_vm4, %v4111_v1 }
 0xcff   :  { %3655 = vmatmul.mubr.msk.f32.vlgmr.msra.gmra.mxu1 %vm182_vm3, %v4564_v3  ;;  %3657 = vmatprep.subr.mxu1 %v4111_v1 }
 0xd00   :  { %3658 = vmatpush3.msra.mxu1 %v4306_v54  ;;  %3668 = vmatprep.subr.mxu0 %v4111_v1 }
 0xd01   :  { %3659 = vmatprep.subr.mxu1 %v4111_v1  ;;  %3669 = vmatpush3.msra.mxu0 %v4317_v56 }
 0xd02   :  { %3660 = vmatpush3.msra.mxu1 %v4311_v55  ;;  %3670 = vmatprep.subr.mxu0 %v4111_v1 }
 0xd03   :  { %3661 = vmatprep.subr.mxu1 %v4111_v1  ;;  %3665 = vmatprep.mubr.msk.f32.mxu1 %vm4112_vm4, %v4111_v1 }
 0xd04   :  { %3662 = vmatpush3.msra.mxu1 %v4323_v57  ;;  %3671 = vmatpush3.msra.mxu0 %v4329_v58 }
 0xd05   :  { %3663 = vmatprep.subr.mxu1 %v4111_v1  ;;  %3672 = vmatprep.subr.mxu0 %v4111_v1 }
 0xd06   :  { %3664 = vmatpush3.msra.mxu1 %v4342_v60  ;;  %3673 = vmatpush3.msra.mxu0 %v4336_v59 }
 0xd07   :  { %3679 = vmatprep.subr.mxu1 %v4111_v1  ;;  %3674 = vmatprep.subr.mxu0 %v4111_v1 }
 0xd08   :  { %3675 = vmatpush3.msra.mxu0 %v4355_v62  ;;  %3676 = vmatprep.mubr.msk.f32.mxu0 %vm4112_vm4, %v4111_v1 }
 0xd09   :  { %3690 = vmatprep.subr.mxu0 %v4111_v1 }
 0xdb6   :  { %v1526_v14 = vpop.f32.mrf.mxu0 }
 0xdb8   :  { %v3627_v4 = vpop.f32.mrf.mxu0 }
 0xdba   :  { %v1601_v5 = vpop.f32.mrf.mxu1 }
 0xdbb   :  { %v1602_v6 = vadd.f32 %v1601_v5, %v1526_v14 }
 0xdbc   :  { %v3638_v8 = vpop.f32.mrf.mxu1 }
 0xdbd   :  { %v1605_v9 = vadd.f32 %v4408_v7, %v1602_v6 }
 0xdbe   :  { %v1696_v10 = vpop.f32.mrf.mxu0 }
 0xdbf   :  { %3908 = vtanh.f32 %v1605_v9  ;;  %v1769_v11 = vpop.f32.mrf.mxu1  ;;  %v3275_v25 = vmul.f32 -1.442695, %v1605_v9 }
 0xdc0   :  { %v1770_v12 = vadd.f32 %v1769_v11, %v1696_v10  ;;  %v3649_v13 = vpop.f32.mrf.mxu0 }
 0xdc1   :  { %v3656_v15 = vpop.f32.mrf.mxu1 }
 0xdc2   :  { %v1773_v16 = vadd.f32 %v4295_v38, %v1770_v12 }
 0xdc4   :  { %3910 = vtanh.f32 %v1773_v16  ;;  %v3278_v26 = vmul.f32 -1.442695, %v1773_v16 }
 0xdc5   :  { %3912 = vpow2.f32 %v3275_v25 }
 0xdc6   :  { %3914 = vpow2.f32 %v3278_v26 }
 0xdcc   :  { %v3909_v17 = vpop.eup %3908 }
 0xdcd   :  { %1615 = vrot.lane.b32.xlu1 %v3909_v17, %s4113_s29 }
 0xdd1   :  { %v3911_v24 = vpop.eup %3910 }
 0xdd2   :  { %1783 = vrot.lane.b32.xlu1 %v3911_v24, %s4113_s29  ;;  %v3913_v27 = vpop.eup %3912 }
 0xdd3   :  { %v1609_v28 = vadd.f32 1.0, %v3913_v27  ;;  %v3915_v29 = vpop.eup %3914 }
 0xdd4   :  { %v1777_v30 = vadd.f32 1.0, %v3915_v29 }
 0xdd5   :  { %3916 = vrcp.f32 %v1609_v28 }
 0xdd6   :  { %3918 = vrcp.f32 %v1777_v30  ;;  %v4674_v30 = vld [vmem:[%s4951_s6 + $0x18] sm:$0xff] }
 0xde2   :  { %v3917_v31 = vpop.eup %3916 }
 0xde3   :  { %v3919_v36 = vpop.eup %3918  ;;  %v1613_v42 = vmul.f32 %v3917_v31, %v4535_v34 }
 0xde4   :  { %v1781_v46 = vmul.f32 %v3919_v36, %v4539_v39 }
 0xe3f   :  { %v1616_v32 = vpop.permute.xlu1 %1615 }
 0xe40   :  { %v1618_v33 = vmul.f32 %v3917_v31, %v1616_v32 }
 0xe42   :  { %1620 = vrot.lane.b32.xlu1 %v1618_v33, %s4105_s24  ;;  %v4691_v33 = vld [vmem:[%s4951_s6 + $0x8] sm:$0xff] }
 0xe44   :  { %v1784_v37 = vpop.permute.xlu1 %1783 }
 0xe45   :  { %v1786_v40 = vmul.f32 %v3919_v36, %v1784_v37  ;;  %v4701_v37 = vld [vmem:[%s4951_s6] sm:$0xff] }
 0xe47   :  { %1788 = vrot.lane.b32.xlu1 %v1786_v40, %s4105_s24  ;;  %v4706_v40 = vld [vmem:[#allocation5] sm:$0xff] }
 0xeb4   :  { %v1621_v41 = vpop.permute.xlu1 %1620 }
 0xeb5   :  { %v4600_v43 = vadd.f32 %v1621_v41, %v1613_v42  ;;  %v2386_v42 = vrot.slane %v4564_v3, 4  ;;  %v4718_v41 = vld [vmem:[%s4952_s7 + $0x18] sm:$0xff] }
 0xeb7   :  { %3920 = vtanh.f32 %v4600_v43 }
 0xeb9   :  { %v1789_v47 = vpop.permute.xlu1 %1788 }
 0xeba   :  { %v4604_v44 = vadd.f32 %v1789_v47, %v1781_v46  ;;  %v4732_v46 = vld [vmem:[%s4952_s7 + $0x10] sm:$0xff] }
 0xebb   :  { %v4741_v47 = vld [vmem:[%s4950_s5 + $0x10] sm:$0xff] }
 0xebc   :  { %3922 = vtanh.f32 %v4604_v44 }
 0xec4   :  { %v3921_v49 = vpop.eup %3920 }
 0xec5   :  { %1626 = vrot.lane.b32.xlu1 %v3921_v49, %s4113_s29  ;;  %v4755_v49 = vld [vmem:[%s4950_s5 + $0x8] sm:$0xff] }
 0xec9   :  { %v3923_v45 = vpop.eup %3922 }
 0xeca   :  { %1794 = vrot.lane.b32.xlu1 %v3923_v45, %s4113_s29  ;;  %v4761_v45 = vld [vmem:[%s4952_s7] sm:$0xff] }
 0xf37   :  { %v1627_v50 = vpop.permute.xlu1 %1626 }
 0xf38   :  { %v1629_v34 = vmul.f32 %v3917_v31, %v1627_v50  ;;  %v4683_v31 = vld [vmem:[%s4951_s6 + $0x10] sm:$0xff]  ;;  %v4769_v50 = vld [vmem:[%s4950_s5] sm:$0xff] }
 0xf3a   :  { %1799 = vrot.lane.b32.xlu0 %v1629_v34, %s4105_s24 }
 0xf3c   :  { %v1795_v51 = vpop.permute.xlu1 %1794 }
 0xf3d   :  { %v1797_v48 = vmul.f32 %v3919_v36, %v1795_v51  ;;  %v4695_v36 = vld [vmem:[#allocation5 + $0x8] sm:$0xff] }
 0xf3f   :  { %1874 = vrot.lane.b32.xlu1 %v1797_v48, %s4105_s24 }
 0xfac   :  { %v1800_v39 = vpop.permute.xlu0 %1799 }
 0xfad   :  { %3666 = vmatmul.mubr.msk.f32.vlgmr.msra.gmra.mxu1 %vm98_vm0, %v1800_v39 }
 0xfae   :  { %3680 = vmatpush3.msra.mxu1 %v4242_v18  ;;  %3687 = vmatprep.mubr.msk.f32.mxu1 %vm4112_vm4, %v4111_v1  ;;  %v2043_v18 = vrot.slane %v4564_v3, 2 }
 0xfaf   :  { %3681 = vmatprep.subr.mxu1 %v4111_v1 }
 0xfb0   :  { %3682 = vmatpush3.msra.mxu1 %v4247_v19 }
 0xfb1   :  { %3683 = vmatprep.subr.mxu1 %v4111_v1  ;;  %v1875_v52 = vpop.permute.xlu1 %1874 }
 0xfb2   :  { %3677 = vmatmul.mubr.msk.f32.vlgmr.msra.gmra.mxu0 %vm98_vm0, %v1875_v52  ;;  %3684 = vmatpush3.msra.mxu1 %v4258_v21 }
 0xfb3   :  { %3685 = vmatprep.subr.mxu1 %v4111_v1  ;;  %3691 = vmatpush3.msra.mxu0 %v4252_v20 }
 0xfb4   :  { %3686 = vmatpush3.msra.mxu1 %v4269_v23  ;;  %3692 = vmatprep.subr.mxu0 %v4111_v1 }
 0xfb5   :  { %3688 = vmatmul.mubr.msk.f32.vlgmr.msra.gmra.mxu1 %vm98_vm0, %v1875_v52  ;;  %3693 = vmatpush3.msra.mxu0 %v4261_v22 }
 0xfb6   :  { %3694 = vmatprep.mubr.msk.f32.mxu0 %vm4112_vm4, %v4111_v1  ;;  %3697 = vmatprep.subr.mxu0 %v4111_v1 }
 0xfb7   :  { %3695 = vmatmul.mubr.msk.f32.vlgmr.msra.gmra.mxu0 %vm182_vm3, %v2043_v18  ;;  %3708 = vmatprep.subr.mxu1 %v4111_v1 }
 0xfb8   :  { %3698 = vmatpush3.msra.mxu0 %v4306_v54  ;;  %3709 = vmatpush3.msra.mxu1 %v4317_v56 }
 0xfb9   :  { %3699 = vmatprep.subr.mxu0 %v4111_v1  ;;  %3710 = vmatprep.subr.mxu1 %v4111_v1 }
 0xfba   :  { %3700 = vmatpush3.msra.mxu0 %v4311_v55  ;;  %3705 = vmatprep.mubr.msk.f32.mxu0 %vm4112_vm4, %v4111_v1 }
 0xfbb   :  { %3701 = vmatprep.subr.mxu0 %v4111_v1  ;;  %3711 = vmatpush3.msra.mxu1 %v4329_v58 }
 0xfbc   :  { %3702 = vmatpush3.msra.mxu0 %v4323_v57  ;;  %3712 = vmatprep.subr.mxu1 %v4111_v1 }
 0xfbd   :  { %3703 = vmatprep.subr.mxu0 %v4111_v1  ;;  %3713 = vmatpush3.msra.mxu1 %v4336_v59 }
 0xfbe   :  { %3704 = vmatpush3.msra.mxu0 %v4342_v60  ;;  %3714 = vmatprep.subr.mxu1 %v4111_v1 }
 0xfbf   :  { %3719 = vmatprep.subr.mxu0 %v4111_v1  ;;  %3715 = vmatpush3.msra.mxu1 %v4355_v62 }
 0xfc0   :  { %3716 = vmatprep.mubr.msk.f32.mxu1 %vm4112_vm4, %v4111_v1  ;;  %3730 = vmatprep.subr.mxu1 %v4111_v1 }
0x106d   :  { %v1869_v19 = vpop.f32.mrf.mxu1 }
0x106f   :  { %v3667_v20 = vpop.f32.mrf.mxu1 }
0x1072   :  { %v1944_v21 = vpop.f32.mrf.mxu0 }
0x1073   :  { %v1945_v22 = vadd.f32 %v1944_v21, %v1869_v19 }
0x1074   :  { %v3678_v23 = vpop.f32.mrf.mxu0 }
0x1075   :  { %v1948_v54 = vadd.f32 %v4408_v7, %v1945_v22  ;;  %v2039_v55 = vpop.f32.mrf.mxu1 }
0x1077   :  { %3924 = vtanh.f32 %v1948_v54  ;;  %v2112_v56 = vpop.f32.mrf.mxu0  ;;  %v3689_v57 = vpop.f32.mrf.mxu1  ;;  %v3281_v35 = vmul.f32 -1.442695, %v1948_v54  ;;  %v4779_v54 = vld [vmem:[%s4953_s8] ss:$0 sm:$0xff] }
0x1078   :  { %v2113_v58 = vadd.f32 %v2112_v56, %v2039_v55 }
0x1079   :  { %v3696_v59 = vpop.f32.mrf.mxu0 }
0x107a   :  { %v2116_v60 = vadd.f32 %v4295_v38, %v2113_v58 }
0x107c   :  { %3926 = vtanh.f32 %v2116_v60  ;;  %v3284_v63 = vmul.f32 -1.442695, %v2116_v60 }
0x107d   :  { %3928 = vpow2.f32 %v3281_v35 }
0x107e   :  { %3930 = vpow2.f32 %v3284_v63 }
0x1084   :  { %v3925_v62 = vpop.eup %3924 }
0x1085   :  { %1958 = vrot.lane.b32.xlu1 %v3925_v62, %s4113_s29 }
0x1089   :  { %v3927_v61 = vpop.eup %3926 }
0x108a   :  { %2126 = vrot.lane.b32.xlu1 %v3927_v61, %s4113_s29  ;;  %v3929_v53 = vpop.eup %3928 }
0x108b   :  { %v1952_v0 = vadd.f32 1.0, %v3929_v53  ;;  %v3931_v2 = vpop.eup %3930 }
0x108c   :  { %v2120_v14 = vadd.f32 1.0, %v3931_v2 }
0x108d   :  { %3932 = vrcp.f32 %v1952_v0 }
0x108e   :  { %3934 = vrcp.f32 %v2120_v14 }
0x109a   :  { %v3933_v4 = vpop.eup %3932 }
0x109b   :  { %v3935_v6 = vpop.eup %3934  ;;  %v1956_v10 = vmul.f32 %v3933_v4, %v4600_v43  ;;  %v4724_v43 = vld [vmem:[%s4950_s5 + $0x18] sm:$0xff] }
0x109c   :  { %v2124_v13 = vmul.f32 %v3935_v6, %v4604_v44  ;;  %v4747_v44 = vld [vmem:[%s4952_s7 + $0x8] sm:$0xff] }
0x10f7   :  { %v1959_v5 = vpop.permute.xlu1 %1958 }
0x10f8   :  { %v1961_v38 = vmul.f32 %v3933_v4, %v1959_v5 }
0x10fa   :  { %1963 = vrot.lane.b32.xlu1 %v1961_v38, %s4105_s24 }
0x10fc   :  { %v2127_v8 = vpop.permute.xlu1 %2126 }
0x10fd   :  { %v2129_v9 = vmul.f32 %v3935_v6, %v2127_v8 }
0x10ff   :  { %2131 = vrot.lane.b32.xlu1 %v2129_v9, %s4105_s24 }
0x116c   :  { %v1964_v11 = vpop.permute.xlu1 %1963 }
0x116d   :  { %v4659_v12 = vadd.f32 %v1964_v11, %v1956_v10 }
0x116f   :  { %3936 = vtanh.f32 %v4659_v12 }
0x1171   :  { %v2132_v15 = vpop.permute.xlu1 %2131 }
0x1172   :  { %v4663_v16 = vadd.f32 %v2132_v15, %v2124_v13 }
0x1174   :  { %3938 = vtanh.f32 %v4663_v16 }
0x117c   :  { %v3937_v17 = vpop.eup %3936 }
0x117d   :  { %1969 = vrot.lane.b32.xlu0 %v3937_v17, %s4113_s29 }
0x1181   :  { %v3939_v24 = vpop.eup %3938 }
0x1182   :  { %2137 = vrot.lane.b32.xlu1 %v3939_v24, %s4113_s29 }
0x11ef   :  { %v1970_v25 = vpop.permute.xlu0 %1969 }
0x11f0   :  { %v1972_v26 = vmul.f32 %v3933_v4, %v1970_v25  ;;  %v2729_v25 = vrot.slane %v4564_v3, 6 }
0x11f2   :  { %2142 = vrot.lane.b32.xlu0 %v1972_v26, %s4105_s24 }
0x11f4   :  { %v2138_v27 = vpop.permute.xlu1 %2137 }
0x11f5   :  { %v2140_v28 = vmul.f32 %v3935_v6, %v2138_v27 }
0x11f7   :  { %2217 = vrot.lane.b32.xlu1 %v2140_v28, %s4105_s24 }
0x1264   :  { %v2143_v29 = vpop.permute.xlu0 %2142 }
0x1265   :  { %3706 = vmatmul.mubr.msk.f32.vlgmr.msra.gmra.mxu0 %vm98_vm0, %v2143_v29 }
0x1266   :  { %3720 = vmatpush3.msra.mxu0 %v4674_v30  ;;  %3727 = vmatprep.mubr.msk.f32.mxu0 %vm4112_vm4, %v4111_v1 }
0x1267   :  { %3721 = vmatprep.subr.mxu0 %v4111_v1 }
0x1268   :  { %3722 = vmatpush3.msra.mxu0 %v4683_v31 }
0x1269   :  { %3723 = vmatprep.subr.mxu0 %v4111_v1  ;;  %v2218_v32 = vpop.permute.xlu1 %2217 }
0x126a   :  { %3717 = vmatmul.mubr.msk.f32.vlgmr.msra.gmra.mxu1 %vm98_vm0, %v2218_v32  ;;  %3724 = vmatpush3.msra.mxu0 %v4691_v33 }
0x126b   :  { %3725 = vmatprep.subr.mxu0 %v4111_v1  ;;  %3731 = vmatpush3.msra.mxu1 %v4695_v36 }
0x126c   :  { %3726 = vmatpush3.msra.mxu0 %v4701_v37  ;;  %3732 = vmatprep.subr.mxu1 %v4111_v1 }
0x126d   :  { %3728 = vmatmul.mubr.msk.f32.vlgmr.msra.gmra.mxu0 %vm98_vm0, %v2218_v32  ;;  %3733 = vmatpush3.msra.mxu1 %v4706_v40 }
0x126e   :  { %3734 = vmatprep.mubr.msk.f32.mxu1 %vm4112_vm4, %v4111_v1  ;;  %3737 = vmatprep.subr.mxu1 %v4111_v1 }
0x126f   :  { %3735 = vmatmul.mubr.msk.f32.vlgmr.msra.gmra.mxu1 %vm182_vm3, %v2386_v42  ;;  %3748 = vmatprep.subr.mxu0 %v4111_v1 }
0x1270   :  { %3738 = vmatpush3.msra.mxu1 %v4718_v41  ;;  %3749 = vmatpush3.msra.mxu0 %v4724_v43 }
0x1271   :  { %3739 = vmatprep.subr.mxu1 %v4111_v1  ;;  %3750 = vmatprep.subr.mxu0 %v4111_v1 }
0x1272   :  { %3740 = vmatpush3.msra.mxu1 %v4732_v46  ;;  %3745 = vmatprep.mubr.msk.f32.mxu1 %vm4112_vm4, %v4111_v1 }
0x1273   :  { %3741 = vmatprep.subr.mxu1 %v4111_v1  ;;  %3751 = vmatpush3.msra.mxu0 %v4741_v47 }
0x1274   :  { %3742 = vmatpush3.msra.mxu1 %v4747_v44  ;;  %3752 = vmatprep.subr.mxu0 %v4111_v1 }
0x1275   :  { %3743 = vmatprep.subr.mxu1 %v4111_v1  ;;  %3753 = vmatpush3.msra.mxu0 %v4755_v49 }
0x1276   :  { %3744 = vmatpush3.msra.mxu1 %v4761_v45  ;;  %3754 = vmatprep.subr.mxu0 %v4111_v1 }
0x1277   :  { %3759 = vmatprep.subr.mxu1 %v4111_v1  ;;  %3755 = vmatpush3.msra.mxu0 %v4769_v50 }
0x1278   :  { %3756 = vmatprep.mubr.msk.f32.mxu0 %vm4112_vm4, %v4111_v1  ;;  %3770 = vmatprep.subr.mxu0 %v4111_v1 }
0x1325   :  { %v2212_v34 = vpop.f32.mrf.mxu0 }
0x1327   :  { %v3707_v51 = vpop.f32.mrf.mxu0 }
0x132a   :  { %v2287_v48 = vpop.f32.mrf.mxu1 }
0x132b   :  { %v2288_v39 = vadd.f32 %v2287_v48, %v2212_v34 }
0x132c   :  { %v3718_v52 = vpop.f32.mrf.mxu1 }
0x132d   :  { %v2291_v18 = vadd.f32 %v4408_v7, %v2288_v39  ;;  %v2382_v19 = vpop.f32.mrf.mxu0 }
0x132f   :  { %3940 = vtanh.f32 %v2291_v18  ;;  %v2455_v20 = vpop.f32.mrf.mxu1  ;;  %v3729_v21 = vpop.f32.mrf.mxu0  ;;  %v3287_v7 = vmul.f32 -1.442695, %v2291_v18 }
0x1330   :  { %v2456_v22 = vadd.f32 %v2455_v20, %v2382_v19 }
0x1331   :  { %v3736_v23 = vpop.f32.mrf.mxu1 }
0x1332   :  { %v2459_v55 = vadd.f32 %v4779_v54, %v2456_v22 }
0x1334   :  { %3942 = vtanh.f32 %v2459_v55  ;;  %v3290_v58 = vmul.f32 -1.442695, %v2459_v55 }
0x1335   :  { %3944 = vpow2.f32 %v3287_v7 }
0x1336   :  { %3946 = vpow2.f32 %v3290_v58 }
0x133c   :  { %v3941_v56 = vpop.eup %3940 }
0x133d   :  { %2301 = vrot.lane.b32.xlu0 %v3941_v56, %s4113_s29 }
0x1341   :  { %v3943_v57 = vpop.eup %3942 }
0x1342   :  { %2469 = vrot.lane.b32.xlu1 %v3943_v57, %s4113_s29  ;;  %v3945_v59 = vpop.eup %3944 }
0x1343   :  { %v2295_v60 = vadd.f32 1.0, %v3945_v59  ;;  %v3947_v62 = vpop.eup %3946 }
0x1344   :  { %v2463_v61 = vadd.f32 1.0, %v3947_v62 }
0x1345   :  { %3948 = vrcp.f32 %v2295_v60 }
0x1346   :  { %3950 = vrcp.f32 %v2463_v61 }
0x1352   :  { %v3949_v35 = vpop.eup %3948 }
0x1353   :  { %v3951_v0 = vpop.eup %3950  ;;  %v2299_v4 = vmul.f32 %v3949_v35, %v4659_v12 }
0x1354   :  { %v2467_v6 = vmul.f32 %v3951_v0, %v4663_v16 }
0x13af   :  { %v2302_v63 = vpop.permute.xlu0 %2301 }
0x13b0   :  { %v2304_v53 = vmul.f32 %v3949_v35, %v2302_v63 }
0x13b2   :  { %2306 = vrot.lane.b32.xlu0 %v2304_v53, %s4105_s24 }
0x13b4   :  { %v2470_v2 = vpop.permute.xlu1 %2469 }
0x13b5   :  { %v2472_v14 = vmul.f32 %v3951_v0, %v2470_v2 }
0x13b7   :  { %2474 = vrot.lane.b32.xlu1 %v2472_v14, %s4105_s24 }
0x1424   :  { %v2307_v5 = vpop.permute.xlu0 %2306 }
0x1425   :  { %v4787_v38 = vadd.f32 %v2307_v5, %v2299_v4 }
0x1427   :  { %3952 = vtanh.f32 %v4787_v38 }
0x1429   :  { %v2475_v8 = vpop.permute.xlu1 %2474 }
0x142a   :  { %v4791_v9 = vadd.f32 %v2475_v8, %v2467_v6 }
0x142c   :  { %3954 = vtanh.f32 %v4791_v9 }
0x1434   :  { %v3953_v10 = vpop.eup %3952 }
0x1435   :  { %2312 = vrot.lane.b32.xlu0 %v3953_v10, %s4113_s29 }
0x1439   :  { %v3955_v11 = vpop.eup %3954 }
0x143a   :  { %2480 = vrot.lane.b32.xlu1 %v3955_v11, %s4113_s29 }
0x14a7   :  { %v2313_v13 = vpop.permute.xlu0 %2312 }
0x14a8   :  { %v2315_v12 = vmul.f32 %v3949_v35, %v2313_v13 }
0x14aa   :  { %2485 = vrot.lane.b32.xlu0 %v2315_v12, %s4105_s24  ;;  %v3027_v12 = vld [vmem:[%s4955_s10 + $0x18] sm:$0xff] }
0x14ac   :  { %v2481_v15 = vpop.permute.xlu1 %2480 }
0x14ad   :  { %v2483_v17 = vmul.f32 %v3951_v0, %v2481_v15  ;;  %v3026_v15 = vld [vmem:[%s4955_s10 + $0x10] sm:$0xff] }
0x14af   :  { %2560 = vrot.lane.b32.xlu1 %v2483_v17, %s4105_s24 }
0x151c   :  { %v2486_v16 = vpop.permute.xlu0 %2485 }
0x151d   :  { %3746 = vmatmul.mubr.msk.f32.vlgmr.msra.gmra.mxu1 %vm98_vm0, %v2486_v16  ;;  %v3025_v16 = vld [vmem:[%s4955_s10 + $0x8] sm:$0xff] }
0x151e   :  { %3760 = vmatpush3.msra.mxu1 %v4674_v30  ;;  %3767 = vmatprep.mubr.msk.f32.mxu1 %vm4112_vm4, %v4111_v1  ;;  %v4842_v30 = vld [vmem:[%s4954_s9] ss:$0 sm:$0xff] }
0x151f   :  { %3761 = vmatprep.subr.mxu1 %v4111_v1 }
0x1520   :  { %3762 = vmatpush3.msra.mxu1 %v4683_v31 }
0x1521   :  { %3763 = vmatprep.subr.mxu1 %v4111_v1  ;;  %v2561_v24 = vpop.permute.xlu1 %2560 }
0x1522   :  { %3757 = vmatmul.mubr.msk.f32.vlgmr.msra.gmra.mxu0 %vm98_vm0, %v2561_v24  ;;  %3764 = vmatpush3.msra.mxu1 %v4691_v33 }
0x1523   :  { %3765 = vmatprep.subr.mxu1 %v4111_v1  ;;  %3771 = vmatpush3.msra.mxu0 %v4695_v36 }
0x1524   :  { %3766 = vmatpush3.msra.mxu1 %v4701_v37  ;;  %3772 = vmatprep.subr.mxu0 %v4111_v1 }
0x1525   :  { %3768 = vmatmul.mubr.msk.f32.vlgmr.msra.gmra.mxu1 %vm98_vm0, %v2561_v24  ;;  %3773 = vmatpush3.msra.mxu0 %v4706_v40  ;;  %v3024_v24 = vld [vmem:[%s4955_s10] sm:$0xff] }
0x1526   :  { %3774 = vmatprep.mubr.msk.f32.mxu0 %vm4112_vm4, %v4111_v1  ;;  %3777 = vmatprep.subr.mxu0 %v4111_v1 }
0x1527   :  { %3775 = vmatmul.mubr.msk.f32.vlgmr.msra.gmra.mxu0 %vm182_vm3, %v2729_v25  ;;  %3788 = vmatprep.subr.mxu1 %v4111_v1  ;;  %v3117_v25 = vld [vmem:[%s4957_s12 + $0x38] sm:$0xff] }
0x1528   :  { %3778 = vmatpush3.msra.mxu0 %v4718_v41  ;;  %3789 = vmatpush3.msra.mxu1 %v4724_v43 }
0x1529   :  { %3779 = vmatprep.subr.mxu0 %v4111_v1  ;;  %3790 = vmatprep.subr.mxu1 %v4111_v1 }
0x152a   :  { %3780 = vmatpush3.msra.mxu0 %v4732_v46  ;;  %3785 = vmatprep.mubr.msk.f32.mxu0 %vm4112_vm4, %v4111_v1 }
0x152b   :  { %3781 = vmatprep.subr.mxu0 %v4111_v1  ;;  %3791 = vmatpush3.msra.mxu1 %v4741_v47 }
0x152c   :  { %3782 = vmatpush3.msra.mxu0 %v4747_v44  ;;  %3792 = vmatprep.subr.mxu1 %v4111_v1 }
0x152d   :  { %3783 = vmatprep.subr.mxu0 %v4111_v1  ;;  %3793 = vmatpush3.msra.mxu1 %v4755_v49 }
0x152e   :  { %3784 = vmatpush3.msra.mxu0 %v4761_v45  ;;  %3794 = vmatprep.subr.mxu1 %v4111_v1 }
0x152f   :  { %3795 = vmatpush3.msra.mxu1 %v4769_v50  ;;  %3796 = vmatprep.mubr.msk.f32.mxu1 %vm4112_vm4, %v4111_v1 }
0x1530   :  { %3799 = vmatprep.subr.mxu0 %v4111_v1  ;;  %3810 = vmatprep.subr.mxu1 %v4111_v1 }
0x15dd   :  { %v2555_v3 = vpop.f32.mrf.mxu1 }
0x15df   :  { %v3747_v26 = vpop.f32.mrf.mxu1 }
0x15e2   :  { %v2630_v27 = vpop.f32.mrf.mxu0 }
0x15e3   :  { %v2631_v28 = vadd.f32 %v2630_v27, %v2555_v3  ;;  %v3116_v3 = vld [vmem:[%s4957_s12 + $0x30] sm:$0xff]  ;;  %v3115_v27 = vld [vmem:[%s4957_s12 + $0x28] sm:$0xff] }
0x15e4   :  { %v3758_v29 = vpop.f32.mrf.mxu0 }
0x15e5   :  { %v2634_v31 = vadd.f32 %v4842_v30, %v2631_v28  ;;  %v2725_v32 = vpop.f32.mrf.mxu1  ;;  %v3114_v29 = vld [vmem:[%s4957_s12 + $0x20] sm:$0xff] }
0x15e7   :  { %3956 = vtanh.f32 %v2634_v31  ;;  %v2798_v33 = vpop.f32.mrf.mxu0  ;;  %v3769_v36 = vpop.f32.mrf.mxu1  ;;  %v3293_v46 = vmul.f32 -1.442695, %v2634_v31 }
0x15e8   :  { %v2799_v37 = vadd.f32 %v2798_v33, %v2725_v32  ;;  %v3113_v32 = vld [vmem:[%s4957_s12 + $0x18] sm:$0xff]  ;;  %v3112_v33 = vld [vmem:[%s4957_s12 + $0x10] sm:$0xff] }
0x15e9   :  { %v3776_v40 = vpop.f32.mrf.mxu0 }
0x15ea   :  { %v2802_v42 = vadd.f32 %v4779_v54, %v2799_v37 }
0x15ec   :  { %3958 = vtanh.f32 %v2802_v42  ;;  %v3296_v47 = vmul.f32 -1.442695, %v2802_v42 }
0x15ed   :  { %3960 = vpow2.f32 %v3293_v46  ;;  %v3300_v46 = vld [vmem:[%s4956_s11] ss:$0 sm:$0xff] }
0x15ee   :  { %3962 = vpow2.f32 %v3296_v47 }
0x15f4   :  { %v3957_v41 = vpop.eup %3956 }
0x15f5   :  { %2644 = vrot.lane.b32.xlu0 %v3957_v41, %s4113_s29  ;;  %v3111_v41 = vld [vmem:[%s4957_s12 + $0x8] sm:$0xff] }
0x15f9   :  { %v3959_v43 = vpop.eup %3958 }
0x15fa   :  { %2812 = vrot.lane.b32.xlu1 %v3959_v43, %s4113_s29  ;;  %v3961_v44 = vpop.eup %3960  ;;  %v3110_v43 = vld [vmem:[%s4957_s12] sm:$0xff] }
0x15fb   :  { %v2638_v49 = vadd.f32 1.0, %v3961_v44  ;;  %v3963_v45 = vpop.eup %3962 }
0x15fc   :  { %v2806_v50 = vadd.f32 1.0, %v3963_v45 }
0x15fd   :  { %3964 = vrcp.f32 %v2638_v49 }
0x15fe   :  { %3966 = vrcp.f32 %v2806_v50 }
0x160a   :  { %v3965_v34 = vpop.eup %3964 }
0x160b   :  { %v3967_v39 = vpop.eup %3966  ;;  %v2642_v19 = vmul.f32 %v3965_v34, %v4787_v38 }
0x160c   :  { %v2810_v22 = vmul.f32 %v3967_v39, %v4791_v9 }
0x1667   :  { %v2645_v51 = vpop.permute.xlu0 %2644 }
0x1668   :  { %v2647_v48 = vmul.f32 %v3965_v34, %v2645_v51 }
0x166a   :  { %2649 = vrot.lane.b32.xlu0 %v2647_v48, %s4105_s24 }
0x166c   :  { %v2813_v52 = vpop.permute.xlu1 %2812 }
0x166d   :  { %v2815_v18 = vmul.f32 %v3967_v39, %v2813_v52 }
0x166f   :  { %2817 = vrot.lane.b32.xlu1 %v2815_v18, %s4105_s24 }
0x16dc   :  { %v2650_v20 = vpop.permute.xlu0 %2649 }
0x16dd   :  { %v2652_v21 = vadd.f32 %v2650_v20, %v2642_v19 }
0x16df   :  { %3968 = vtanh.f32 %v2652_v21 }
0x16e1   :  { %v2818_v23 = vpop.permute.xlu1 %2817 }
0x16e2   :  { %v4852_v54 = vadd.f32 %v2818_v23, %v2810_v22 }
0x16e4   :  { %3970 = vtanh.f32 %v4852_v54 }
0x16ec   :  { %v3969_v55 = vpop.eup %3968 }
0x16ed   :  { %2655 = vrot.lane.b32.xlu0 %v3969_v55, %s4113_s29 }
0x16f1   :  { %v3971_v56 = vpop.eup %3970 }
0x16f2   :  { %2823 = vrot.lane.b32.xlu1 %v3971_v56, %s4113_s29 }
0x175f   :  { %v2656_v57 = vpop.permute.xlu0 %2655 }
0x1760   :  { %v2658_v7 = vmul.f32 %v3965_v34, %v2656_v57 }
0x1762   :  { %2828 = vrot.lane.b32.xlu0 %v2658_v7, %s4105_s24 }
0x1764   :  { %v2824_v58 = vpop.permute.xlu1 %2823 }
0x1765   :  { %v2826_v59 = vmul.f32 %v3967_v39, %v2824_v58 }
0x1767   :  { %2903 = vrot.lane.b32.xlu1 %v2826_v59, %s4105_s24 }
0x17d4   :  { %v2829_v60 = vpop.permute.xlu0 %2828 }
0x17d5   :  { %3786 = vmatmul.mubr.msk.f32.vlgmr.msra.gmra.mxu0 %vm98_vm0, %v2829_v60 }
0x17d6   :  { %3807 = vmatprep.mubr.msk.f32.mxu0 %vm4112_vm4, %v4111_v1  ;;  %3800 = vmatpush3.msra.mxu0 %v3027_v12 }
0x17d7   :  { %3801 = vmatprep.subr.mxu0 %v4111_v1 }
0x17d8   :  { %3802 = vmatpush3.msra.mxu0 %v3026_v15 }
0x17d9   :  { %v2904_v62 = vpop.permute.xlu1 %2903  ;;  %3803 = vmatprep.subr.mxu0 %v4111_v1 }
0x17da   :  { %3004 = vst.msk [vmem:[#allocation8] sm:$0x3] %vm3003_vm11, %v2904_v62  ;;  %3797 = vmatmul.mubr.msk.f32.vlgmr.msra.gmra.mxu1 %vm98_vm0, %v2904_v62  ;;  %3804 = vmatpush3.msra.mxu0 %v3025_v16 }
0x17db   :  { %3826 = vmatprep.mubr.msk.f32.mxu1 %vm4112_vm4, %v4111_v1  ;;  %3805 = vmatprep.subr.mxu0 %v4111_v1 }
0x17dc   :  { %3806 = vmatpush3.msra.mxu0 %v3024_v24  ;;  %3811 = vmatpush3.msra.mxu1 %v3117_v25 }
0x17dd   :  { %3812 = vmatprep.subr.mxu1 %v4111_v1 }
0x17de   :  { %3813 = vmatpush3.msra.mxu1 %v3116_v3 }
0x17df   :  { %3814 = vmatprep.subr.mxu1 %v4111_v1 }
0x17e0   :  { %3815 = vmatpush3.msra.mxu1 %v3115_v27 }
0x17e1   :  { %3816 = vmatprep.subr.mxu1 %v4111_v1 }
0x17e2   :  { %3817 = vmatpush3.msra.mxu1 %v3114_v29 }
0x17e3   :  { %3818 = vmatprep.subr.mxu1 %v4111_v1 }
0x17e4   :  { %3819 = vmatpush3.msra.mxu1 %v3113_v32 }
0x17e5   :  { %3820 = vmatprep.subr.mxu1 %v4111_v1 }
0x17e6   :  { %3821 = vmatpush3.msra.mxu1 %v3112_v33 }
0x17e7   :  { %3822 = vmatprep.subr.mxu1 %v4111_v1 }
0x17e8   :  { %3823 = vmatpush3.msra.mxu1 %v3111_v41 }
0x17e9   :  { %3824 = vmatprep.subr.mxu1 %v4111_v1 }
0x17ea   :  { %3825 = vmatpush3.msra.mxu1 %v3110_v43 }
0x1895   :  { %v2898_v61 = vpop.f32.mrf.mxu0 }
0x1897   :  { %v3787_v35 = vpop.f32.mrf.mxu0 }
0x189a   :  { %v2973_v63 = vpop.f32.mrf.mxu1 }
0x189b   :  { %v2974_v53 = vadd.f32 %v2973_v63, %v2898_v61 }
0x189c   :  { %v3798_v0 = vpop.f32.mrf.mxu1 }
0x189d   :  { %v2977_v2 = vadd.f32 %v4842_v30, %v2974_v53 }
0x189f   :  { %3972 = vtanh.f32 %v2977_v2  ;;  %v3299_v4 = vmul.f32 -1.442695, %v2977_v2 }
0x18a1   :  { %3974 = vpow2.f32 %v3299_v4 }
0x18ac   :  { %v3973_v14 = vpop.eup %3972 }
0x18ad   :  { %2987 = vrot.lane.b32.xlu0 %v3973_v14, %s4113_s29 }
0x18ae   :  { %v3975_v5 = vpop.eup %3974 }
0x18af   :  { %v2981_v38 = vadd.f32 1.0, %v3975_v5 }
0x18b1   :  { %3976 = vrcp.f32 %v2981_v38 }
0x18be   :  { %v3977_v6 = vpop.eup %3976 }
0x18bf   :  { %v2985_v10 = vmul.f32 %v3977_v6, %v2652_v21 }
0x191f   :  { %v2988_v8 = vpop.permute.xlu0 %2987 }
0x1920   :  { %v2990_v9 = vmul.f32 %v3977_v6, %v2988_v8 }
0x1922   :  { %2992 = vrot.lane.b32.xlu1 %v2990_v9, %s4105_s24 }
0x1994   :  { %v2993_v11 = vpop.permute.xlu1 %2992 }
0x1995   :  { %v2995_v13 = vadd.f32 %v2993_v11, %v2985_v10 }
0x1997   :  { %3978 = vtanh.f32 %v2995_v13 }
0x19a4   :  { %v3979_v17 = vpop.eup %3978 }
0x19a5   :  { %2998 = vrot.lane.b32.xlu0 %v3979_v17, %s4113_s29 }
0x1a17   :  { %v2999_v26 = vpop.permute.xlu0 %2998 }
0x1a18   :  { %v3001_v28 = vmul.f32 %v3977_v6, %v2999_v26 }
0x1a1a   :  { %3011 = vrot.lane.b32.xlu0 %v3001_v28, %s4105_s24  ;;  %v3022_v30 = vadd.f32 %v3001_v28, %v2826_v59 }
0x1a1c   :  { %v3023_v31 = vmul.f32 0.5, %v3022_v30 }
0x1a1e   :  { %3017 = vrot.lane.b32.xlu0 %v2995_v13, %s4114_s23  ;;  %3036 = vrot.lane.b32.xlu1 %v3023_v31, %s4105_s24 }
0x1a22   :  { %3006 = vrot.lane.b32.xlu1 %v4852_v54, %s4114_s23 }
0x1a8c   :  { %v3012_v36 = vpop.permute.xlu0 %3011 }
0x1a8d   :  { %3015 = vst.msk [vmem:[#allocation8 + $0x2] sm:$0x3] %vm3003_vm11, %v3012_v36 }
0x1a90   :  { %v3018_v37 = vpop.permute.xlu0 %3017  ;;  %v3037_v40 = vpop.permute.xlu1 %3036 }
0x1a91   :  { %3021 = vst.msk [vmem:[#allocation10 + $0x2] sm:$0x3] %vm3003_vm11, %v3018_v37  ;;  %3808 = vmatmul.mubr.msk.f32.vlgmr.msra.gmra.mxu0 %vm98_vm0, %v3037_v40 }
0x1a94   :  { %v3007_v42 = vpop.permute.xlu1 %3006 }
0x1a95   :  { %3009 = vst.msk [vmem:[#allocation10] sm:$0x3] %vm3003_vm11, %v3007_v42 }
0x1b51   :  { %v3106_v47 = vpop.f32.mrf.mxu0 }
0x1b52   :  { %v3107_v44 = vadd.f32 %v3300_v46, %v3106_v47 }
0x1b53   :  { %v3809_v49 = vpop.f32.mrf.mxu0 }
0x1b54   :  { %3827 = vmatmul.mubr.msk.f32.vlgmr.msra.gmra.mxu1 %vm3125_vm12, %v3107_v44 }
0x1b55   :  { %4047 = shalt.err (!%p4044_p0)
}
0x1b56   :  { %3221 = dma.vmem_to_hbm [thread:$0]  %s3216_s30, 64, %s4960_s15, [#allocation9], %s4105_s24, %s4105_s24, %s4106_s25  }
0x1b57   :  { %s4116_s17 = smov [#allocation10]  }
0x1b58   :  { %s3227_s2 = sshll.u32 %s4116_s17, 4  ;;  %s3228_s2 = int_to_ptr.vmem [resolvable:$true] %s3227_s2 }
0x1b59   :  { %s4056_s1 = scalar_lea.vmem %s3228_s2, 64  ;;  %p4061_p2 = scmp.lt.s32.totalorder %s3228_s2, %s3228_s2 }
0x1b5a   :  { %p4057_p1 = scmp.ne.s32.totalorder %s3228_s2, %s4056_s1  ;;  %p4062_p3 = scmp.lt.s32.totalorder %s4056_s1, %s4056_s1 }
0x1b5c   :  { %p4063_p4 = por %p4062_p3, %p4061_p2 }
0x1b5e   :  { %p4064_p5 = pnand %p4063_p4, %p4057_p1 }
0x1b60   :  { %4067 = shalt.err (!%p4064_p5)
}
0x1b61   :  { %3233 = dma.vmem_to_hbm [thread:$0]  %s3228_s2, 64, %s4961_s16, [#allocation9], %s4105_s24, %s4105_s24, %s4106_s25  }
0x1b62   :  { %v3302_v1 = vld [vmem:[%s4958_s13] ss:$0 sm:$0xff]  ;;  %s4117_s15 = smov [#allocation7]  }
0x1b63   :  { %s3206_s10 = sshll.u32 %s4117_s15, 4  ;;  %s3207_s10 = int_to_ptr.vmem [resolvable:$true] %s3206_s10 }
0x1b64   :  { %s4076_s20 = scalar_lea.vmem %s3207_s10, 32  ;;  %p4081_p7 = scmp.lt.s32.totalorder %s3207_s10, %s3207_s10 }
0x1b65   :  { %p4077_p6 = scmp.ne.s32.totalorder %s3207_s10, %s4076_s20  ;;  %p4082_p8 = scmp.lt.s32.totalorder %s4076_s20, %s4076_s20 }
0x1b67   :  { %p4083_p9 = por %p4082_p8, %p4081_p7 }
0x1b69   :  { %p4084_p10 = pnand %p4083_p9, %p4077_p6 }
0x1c14   :  { %v3195_v45 = vpop.f32.mrf.mxu1 }
0x1c15   :  { %v3196_v50 = vadd.f32 %v3302_v1, %v3195_v45 }
0x1c16   :  { %v3828_v34 = vpop.f32.mrf.mxu1 }
0x1c17   :  { %3199 = vst.msk [vmem:[#allocation7] sm:$0x3] %vm3003_vm11, %v3196_v50 }
0x1c18   :  { %4087 = shalt.err (!%p4084_p10)
}
0x1c19   :  { %3209 = dma.vmem_to_hbm [thread:$0]  %s3207_s10, 32, %s4959_s14, [#allocation4]  }
0x1c1a   :  { %4100 = dma.done.wait [#allocation4], 32  }
0x1c1b   :  { %4101 = vsyncadd [#allocation4], 4294967264 }
0x1c1c   :  { %4102 = dma.done.wait [#allocation9], 128  }
0x1c1d   :  { %4103 = vsyncadd [#allocation9], 4294967168 }
0x1c1e   :  { %3243 = vsyncpa [#allocation3], 1 }
0x1c1f   :  { %3244 = vsyncpa [#allocation6], 1 }
0x1c20   :  { %3245 = vsyncpa [#allocation4], 1 }
0x1c21   :  { %3246 = vsyncpa [#allocation9], 1 }

</bundles_post_ra>
